<compile_context>
chip_gen: v5e
topology: v5e:2x2
jax: 0.10.0
libtpu: 0.0.40
codegen_flags: <defaults>
</compile_context>

<pallas_src>
import jax
import jax.numpy as jnp
from jax.experimental import pallas as pl
from jax.experimental.pallas import tpu as pltpu

# --- "config" values (synthetic, deterministic) ---
EMB_DIM = 16
HIDDEN_DIM = 32
RAND_UNIF_INIT_MAG = 0.02
GATE_PITCH = 128   # lane-aligned column pitch per direction: [r | z | n | bhn/pad] (4H <= 128)


# ----------------------------- Pallas kernel -----------------------------

def encoder_l_kernel(x_ref, lens_ref, wi_ref, b_ref, whh_ref, wepi_ref,
                     outfeat_ref, hid_ref,
                     gi_ref, o_ref):
    """x_ref:   (T*B, E)    time-major flattened embeddings
       lens_ref:(B, 1)      int32 sequence lengths (mask built in-kernel)
       wi_ref:  (E, 2*GP)   input weights, per-direction gates lane-aligned to GP=128, pads zero
       b_ref:   (1, 2*GP)   folded biases: r,z -> b_ih+b_hh ; n -> b_ih ; pad lanes hold b_hh_n
       whh_ref: (2H, 2*GP)  block-diagonal hidden weights (fwd rows 0:H -> cols 0:3H,
                            bwd rows H:2H -> cols GP:GP+3H)
       wepi_ref:(2H, 3H)    packed epilogue weights [w_o.T | (w_o.T @ w_f.T) | w_hp.T]
       outfeat_ref: (T*B, 2H)  [encoder_outputs | encoder_feature] (time-major rows)
       hid_ref:     (B, H)     projected final hidden state
       gi_ref:  (T*B, 2*GP) scratch: precomputed input-gate activations
       o_ref:   (T*B, 2H)   scratch: per-step GRU outputs, fwd lanes [0:H], bwd lanes [H:2H]."""
    TB = x_ref.shape[0]
    B = hid_ref.shape[0]
    H = hid_ref.shape[1]
    T = TB // B
    GP = gi_ref.shape[1] // 2

    # ---- hoisted input projection: one MXU matmul covers all timesteps and both directions ----
    gi_ref[...] = (jnp.dot(x_ref[...], wi_ref[...], preferred_element_type=jnp.float32)
                   + b_ref[...])

    # ---- hoisted loads / broadcasts (kept out of the unrolled loop) ----
    whh = whh_ref[...]                                                   # (2H, 2*GP)
    bhn_f = jnp.broadcast_to(b_ref[:, 3 * H:4 * H], (B, H))              # hidden n-gate biases
    bhn_b = jnp.broadcast_to(b_ref[:, GP + 3 * H:GP + 4 * H], (B, H))
    lens_bH = jnp.broadcast_to(lens_ref[...], (B, H))                    # (B, H) int32

    h2 = jnp.zeros((B, 2 * H), jnp.float32)                              # [h_fwd | h_bwd]

    # ---- fully unrolled recurrence: fwd step t and bwd step T-1-t share one hidden matmul ----
    for i in range(T):
        tf = i
        tb = T - 1 - i

        gi_f = gi_ref[tf * B:(tf + 1) * B, 0:3 * H]                      # (B, 3H)
        gi_b = gi_ref[tb * B:(tb + 1) * B, GP:GP + 3 * H]                # (B, 3H)

        # single block-diagonal hidden matmul -> all 6 gate pre-activations
        gh = jnp.dot(h2, whh, preferred_element_type=jnp.float32)        # (B, 2*GP)

        r_f = jax.nn.sigmoid(gi_f[:, 0:H] + gh[:, 0:H])
        z_f = jax.nn.sigmoid(gi_f[:, H:2 * H] + gh[:, H:2 * H])
        n_f = jnp.tanh(gi_f[:, 2 * H:3 * H] + r_f * (gh[:, 2 * H:3 * H] + bhn_f))

        r_b = jax.nn.sigmoid(gi_b[:, 0:H] + gh[:, GP:GP + H])
        z_b = jax.nn.sigmoid(gi_b[:, H:2 * H] + gh[:, GP + H:GP + 2 * H])
        n_b = jnp.tanh(gi_b[:, 2 * H:3 * H] + r_b * (gh[:, GP + 2 * H:GP + 3 * H] + bhn_b))

        h_f = h2[:, 0:H]
        h_b = h2[:, H:2 * H]
        hn_f = n_f + z_f * (h_f - n_f)                                   # (1-z)*n + z*h
        hn_b = n_b + z_b * (h_b - n_b)

        valid_f = lens_bH > tf                                           # (B, H) bool
        valid_b = lens_bH > tb

        # padded positions emit 0 (pad_packed_sequence)
        o_ref[tf * B:(tf + 1) * B, 0:H] = jnp.where(valid_f, hn_f, 0.0)
        o_ref[tb * B:(tb + 1) * B, H:2 * H] = jnp.where(valid_b, hn_b, 0.0)

        # padded positions keep the previous hidden state (packing)
        h2 = jnp.concatenate([jnp.where(valid_f, hn_f, h_f),
                              jnp.where(valid_b, hn_b, h_b)], axis=-1)

    # ---- epilogue: fused bias-free projections ----
    w_epi = wepi_ref[...]                                                # (2H, 3H)
    # columns [0:H] -> encoder_outputs, [H:2H] -> encoder_feature (wf pre-folded into wo)
    outfeat_ref[...] = jnp.dot(o_ref[...], w_epi[:, 0:2 * H],
                               preferred_element_type=jnp.float32)       # (T*B, 2H)
    hid_ref[...] = jnp.dot(h2, w_epi[:, 2 * H:3 * H],
                           preferred_element_type=jnp.float32)           # (B, H)


# ----------------------------- wrapper -----------------------------

def encoder_l_forward(input_embed, seq_lens, params):
    """input_embed: (B, T, EMB_DIM) float32, seq_lens: (B,) int32.
    Returns (encoder_outputs (B,T,H), encoder_feature (B*T,H), hidden (1,B,H))."""
    B, T, E = input_embed.shape
    H = HIDDEN_DIM
    GP2 = params['wi_all'].shape[1]

    # time-major, flattened to 2-D so the kernel never reshapes 3-D buffers
    x2 = jnp.transpose(input_embed, (1, 0, 2)).reshape(T * B, E).astype(jnp.float32)
    lens = seq_lens.reshape(B, 1).astype(jnp.int32)

    ins = (x2, lens,
           params['wi_all'], params['b_row'], params['whh_bd'], params['w_epi'])

    vspec = pl.BlockSpec(memory_space=pltpu.MemorySpace.VMEM)
    outfeat, hid = pl.pallas_call(
        encoder_l_kernel,
        out_shape=(jax.ShapeDtypeStruct((T * B, 2 * H), jnp.float32),
                   jax.ShapeDtypeStruct((B, H), jnp.float32)),
        in_specs=[vspec] * len(ins),
        out_specs=(vspec, vspec),
        scratch_shapes=[pltpu.VMEM((T * B, GP2), jnp.float32),    # precomputed input gates
                        pltpu.VMEM((T * B, 2 * H), jnp.float32)],  # fwd|bwd GRU outputs
    )(*ins)

    of3 = jnp.transpose(outfeat.reshape(T, B, 2 * H), (1, 0, 2))          # (B, T, 2H)
    encoder_outputs = of3[:, :, 0:H]                                       # (B, T, H)
    encoder_feature = of3[:, :, H:2 * H].reshape(B * T, H)                 # (B*T, H)
    hidden = hid[None, :, :]                                               # (1, B, H)
    return encoder_outputs, encoder_feature, hidden


# ----------------------------- deterministic parameter init -----------------------------

def init_params(key):
    E, H, GP = EMB_DIM, HIDDEN_DIM, GATE_PITCH
    assert 4 * H <= GP, "gate pitch must hold r|z|n|bhn per direction"
    mag = RAND_UNIF_INIT_MAG
    keys = jax.random.split(key, 7)

    def u(k, shape):
        return jax.random.uniform(k, shape, jnp.float32, -mag, mag)

    def gru_bias():  # replicates init_gru_wt's bias pattern: zeros, then [n//4, n//2) = 1.0
        n = 3 * H
        return jnp.zeros((n,), jnp.float32).at[n // 4: n // 2].set(1.0)

    # GRU weights (PyTorch layout: (3H, in), gate order r, z, n), uniform(-mag, mag)
    w_ih_f = u(keys[0], (3 * H, E)); w_hh_f = u(keys[1], (3 * H, H))
    w_ih_b = u(keys[2], (3 * H, E)); w_hh_b = u(keys[3], (3 * H, H))
    b_ih_f = gru_bias(); b_hh_f = gru_bias()
    b_ih_b = gru_bias(); b_hh_b = gru_bias()

    # Linear weights (PyTorch nn.Linear layout: (out, in)), deterministic uniform
    w_o = u(keys[4], (H, 2 * H))    # w_h_o_l
    w_hp = u(keys[5], (H, 2 * H))   # w_h_h_l
    w_f = u(keys[6], (H, H))        # W_h_f_l

    # ---- fused / lane-aligned kernel layouts ----
    def pack_dir_w(w_ih):                                   # (3H, E) -> (E, GP), pads zero
        w = jnp.zeros((E, GP), jnp.float32)
        return w.at[:, 0:3 * H].set(w_ih.T)

    wi_all = jnp.concatenate([pack_dir_w(w_ih_f), pack_dir_w(w_ih_b)], axis=1)   # (E, 2*GP)

    def pack_dir_b(b_ih, b_hh):
        # r,z: fold both biases; n: input bias only; lanes 3H:4H carry the hidden n-bias
        # (applied inside r*(.) in the kernel); remaining pad lanes zero.
        return jnp.concatenate([b_ih[0:2 * H] + b_hh[0:2 * H],
                                b_ih[2 * H:3 * H],
                                b_hh[2 * H:3 * H],
                                jnp.zeros((GP - 4 * H,), jnp.float32)])

    b_row = jnp.concatenate([pack_dir_b(b_ih_f, b_hh_f),
                             pack_dir_b(b_ih_b, b_hh_b)])[None, :]                # (1, 2*GP)

    # block-diagonal hidden weight: one (B,2H)@(2H,2*GP) matmul per step covers both directions
    whh_bd = jnp.zeros((2 * H, 2 * GP), jnp.float32)
    whh_bd = whh_bd.at[0:H, 0:3 * H].set(w_hh_f.T)
    whh_bd = whh_bd.at[H:2 * H, GP:GP + 3 * H].set(w_hh_b.T)

    wo_cat = w_o.T                    # (2H, H)
    wof = wo_cat @ w_f.T              # (2H, H): W_h_f_l folded into w_h_o_l
    whp_cat = w_hp.T                  # (2H, H)
    w_epi = jnp.concatenate([wo_cat, wof, whp_cat], axis=1)                        # (2H, 3H)

    params = dict(wi_all=wi_all, b_row=b_row, whh_bd=whh_bd, w_epi=w_epi)
    raw = dict(w_ih_f=w_ih_f, w_hh_f=w_hh_f, b_ih_f=b_ih_f, b_hh_f=b_hh_f,
               w_ih_b=w_ih_b, w_hh_b=w_hh_b, b_ih_b=b_ih_b, b_hh_b=b_hh_b,
               w_o=w_o, w_hp=w_hp, w_f=w_f)
    return params, raw


# ----------------------------- pure-JAX reference (correctness check) -----------------------------

def reference_forward(x, seq_lens, raw):
    B, T, _ = x.shape
    H = HIDDEN_DIM
    mask = (jnp.arange(T)[None, :] < seq_lens[:, None]).astype(jnp.float32)  # (B, T)

    def run_dir(Wih, Whh, bih, bhh, reverse):
        h = jnp.zeros((B, H), jnp.float32)
        outs = [None] * T
        order = range(T - 1, -1, -1) if reverse else range(T)
        for t in order:
            xt = x[:, t]
            mt = mask[:, t][:, None]
            gi = xt @ Wih.T + bih
            gh = h @ Whh.T + bhh
            r = jax.nn.sigmoid(gi[:, :H] + gh[:, :H])
            z = jax.nn.sigmoid(gi[:, H:2 * H] + gh[:, H:2 * H])
            n = jnp.tanh(gi[:, 2 * H:] + r * gh[:, 2 * H:])
            hn = (1.0 - z) * n + z * h
            outs[t] = mt * hn
            h = mt * hn + (1.0 - mt) * h
        return jnp.stack(outs, axis=1), h

    of, hf = run_dir(raw['w_ih_f'], raw['w_hh_f'], raw['b_ih_f'], raw['b_hh_f'], False)
    ob, hb = run_dir(raw['w_ih_b'], raw['w_hh_b'], raw['b_ih_b'], raw['b_hh_b'], True)
    enc_out = jnp.concatenate([of, ob], axis=-1) @ raw['w_o'].T              # (B, T, H)
    hid = jnp.concatenate([hf, hb], axis=-1) @ raw['w_hp'].T                 # (B, H)
    feat = enc_out.reshape(-1, H) @ raw['w_f'].T                             # (B*T, H)
    return enc_out, feat, hid[None]


# ----------------------------- main -----------------------------

if __name__ == "__main__":
    key = jax.random.PRNGKey(0)
    pkey, xkey = jax.random.split(key)
    params, raw = init_params(pkey)

    B, T = 2, 8
    input_embed = jax.random.normal(xkey, (B, T, EMB_DIM), jnp.float32)
    seq_lens = jnp.array([8, 5], dtype=jnp.int32)   # variable lengths (packing semantics)

    enc_out, enc_feat, hidden = encoder_l_forward(input_embed, seq_lens, params)
    jax.block_until_ready((enc_out, enc_feat, hidden))

    # shape + numerical check against a pure-JAX reference with identical packing semantics
    r_out, r_feat, r_hid = reference_forward(input_embed, seq_lens, raw)
    assert enc_out.shape == (B, T, HIDDEN_DIM)
    assert enc_feat.shape == (B * T, HIDDEN_DIM)
    assert hidden.shape == (1, B, HIDDEN_DIM)
    assert jnp.allclose(enc_out, r_out, atol=1e-5), float(jnp.max(jnp.abs(enc_out - r_out)))
    assert jnp.allclose(enc_feat, r_feat, atol=1e-5), float(jnp.max(jnp.abs(enc_feat - r_feat)))
    assert jnp.allclose(hidden, r_hid, atol=1e-5), float(jnp.max(jnp.abs(hidden - r_hid)))

    print("KERNEL_OK")
</pallas_src>

<mosaic_0001>
module attributes {stable_mosaic.version = 11 : i64} {
  func.func @encoder_l_kernel(%arg0: memref<16x16xf32, #tpu.memory_space<vmem>>, %arg1: memref<2x1xi32, #tpu.memory_space<vmem>>, %arg2: memref<16x256xf32, #tpu.memory_space<vmem>>, %arg3: memref<1x256xf32, #tpu.memory_space<vmem>>, %arg4: memref<64x256xf32, #tpu.memory_space<vmem>>, %arg5: memref<64x96xf32, #tpu.memory_space<vmem>>, %arg6: memref<16x64xf32, #tpu.memory_space<vmem>>, %arg7: memref<2x32xf32, #tpu.memory_space<vmem>>, %arg8: memref<16x256xf32, #tpu.memory_space<vmem>>, %arg9: memref<16x64xf32, #tpu.memory_space<vmem>>) attributes {dimension_semantics = [], scalar_prefetch = 0 : i64, scratch_operands = 2 : i64, tpu.core_type = #tpu.core_type<tc>} {
    %c0 = arith.constant 0 : index
    %c0_0 = arith.constant 0 : index
    %0 = vector.load %arg0[%c0, %c0_0] : memref<16x16xf32, #tpu.memory_space<vmem>>, vector<16x16xf32>
    %c0_1 = arith.constant 0 : index
    %c0_2 = arith.constant 0 : index
    %1 = vector.load %arg2[%c0_1, %c0_2] : memref<16x256xf32, #tpu.memory_space<vmem>>, vector<16x256xf32>
    %cst = arith.constant dense<0.000000e+00> : vector<16x256xf32>
    %2 = tpu.matmul %0, %1, %cst {dimension_numbers = #tpu.dot_dimension_numbers<[1], [0], [0], [1], [0, 0, 1, 1], [], []>} : vector<16x16xf32>, vector<16x256xf32>, vector<16x256xf32> -> vector<16x256xf32>
    %c0_3 = arith.constant 0 : index
    %c0_4 = arith.constant 0 : index
    %3 = vector.load %arg3[%c0_3, %c0_4] : memref<1x256xf32, #tpu.memory_space<vmem>>, vector<1x256xf32>
    %4 = vector.broadcast %3 : vector<1x256xf32> to vector<16x256xf32>
    %5 = arith.addf %2, %4 : vector<16x256xf32>
    %c0_5 = arith.constant 0 : index
    %c0_6 = arith.constant 0 : index
    %6 = vector.load %arg8[%c0_5, %c0_6] : memref<16x256xf32, #tpu.memory_space<vmem>>, vector<16x256xf32>
    tpu.vector_store %arg8[%c0_5, %c0_6], %5 {strides = array<i32>} : memref<16x256xf32, #tpu.memory_space<vmem>>, vector<16x256xf32>,
    %c0_7 = arith.constant 0 : index
    %c0_8 = arith.constant 0 : index
    %7 = vector.load %arg4[%c0_7, %c0_8] : memref<64x256xf32, #tpu.memory_space<vmem>>, vector<64x256xf32>
    %c0_9 = arith.constant 0 : index
    %c96 = arith.constant 96 : index
    %8 = vector.load %arg3[%c0_9, %c96] : memref<1x256xf32, #tpu.memory_space<vmem>>, vector<1x32xf32>
    %9 = vector.shape_cast %8 : vector<1x32xf32> to vector<1x32xf32>
    %10 = vector.broadcast %9 : vector<1x32xf32> to vector<2x32xf32>
    %c0_10 = arith.constant 0 : index
    %c224 = arith.constant 224 : index
    %11 = vector.load %arg3[%c0_10, %c224] : memref<1x256xf32, #tpu.memory_space<vmem>>, vector<1x32xf32>
    %12 = vector.shape_cast %11 : vector<1x32xf32> to vector<1x32xf32>
    %13 = vector.broadcast %12 : vector<1x32xf32> to vector<2x32xf32>
    %c0_11 = arith.constant 0 : index
    %c0_12 = arith.constant 0 : index
    %14 = vector.load %arg1[%c0_11, %c0_12] : memref<2x1xi32, #tpu.memory_space<vmem>>, vector<2x1xi32>
    %15 = vector.shape_cast %14 : vector<2x1xi32> to vector<2x1xi32>
    %16 = vector.broadcast %15 : vector<2x1xi32> to vector<2x32xi32>
    %cst_13 = arith.constant 0.000000e+00 : f32
    %17 = vector.broadcast %cst_13 : f32 to vector<2x64xf32>
    %c0_14 = arith.constant 0 : index
    %c0_15 = arith.constant 0 : index
    %18 = vector.load %arg8[%c0_14, %c0_15] : memref<16x256xf32, #tpu.memory_space<vmem>>, vector<2x96xf32>
    %c14 = arith.constant 14 : index
    %c128 = arith.constant 128 : index
    %19 = vector.load %arg8[%c14, %c128] : memref<16x256xf32, #tpu.memory_space<vmem>>, vector<2x96xf32>
    %cst_16 = arith.constant dense<0.000000e+00> : vector<2x256xf32>
    %20 = tpu.matmul %17, %7, %cst_16 {dimension_numbers = #tpu.dot_dimension_numbers<[1], [0], [0], [1], [0, 0, 1, 1], [], []>} : vector<2x64xf32>, vector<64x256xf32>, vector<2x256xf32> -> vector<2x256xf32>
    %21 = vector.extract_strided_slice %18 {offsets = [0, 0], sizes = [2, 32], strides = [1, 1]} : vector<2x96xf32> to vector<2x32xf32>
    %22 = vector.extract_strided_slice %20 {offsets = [0, 0], sizes = [2, 32], strides = [1, 1]} : vector<2x256xf32> to vector<2x32xf32>
    %23 = arith.addf %21, %22 : vector<2x32xf32>
    %24 = arith.negf %23 : vector<2x32xf32>
    %25 = math.exp %24 : vector<2x32xf32>
    %cst_17 = arith.constant 1.000000e+00 : f32
    %26 = vector.broadcast %cst_17 : f32 to vector<2x32xf32>
    %27 = arith.addf %26, %25 : vector<2x32xf32>
    %28 = arith.divf %26, %27 : vector<2x32xf32>
    %29 = vector.extract_strided_slice %18 {offsets = [0, 32], sizes = [2, 32], strides = [1, 1]} : vector<2x96xf32> to vector<2x32xf32>
    %30 = vector.extract_strided_slice %20 {offsets = [0, 32], sizes = [2, 32], strides = [1, 1]} : vector<2x256xf32> to vector<2x32xf32>
    %31 = arith.addf %29, %30 : vector<2x32xf32>
    %32 = arith.negf %31 : vector<2x32xf32>
    %33 = math.exp %32 : vector<2x32xf32>
    %cst_18 = arith.constant 1.000000e+00 : f32
    %34 = vector.broadcast %cst_18 : f32 to vector<2x32xf32>
    %35 = arith.addf %34, %33 : vector<2x32xf32>
    %36 = arith.divf %34, %35 : vector<2x32xf32>
    %37 = vector.extract_strided_slice %18 {offsets = [0, 64], sizes = [2, 32], strides = [1, 1]} : vector<2x96xf32> to vector<2x32xf32>
    %38 = vector.extract_strided_slice %20 {offsets = [0, 64], sizes = [2, 32], strides = [1, 1]} : vector<2x256xf32> to vector<2x32xf32>
    %39 = arith.addf %38, %10 : vector<2x32xf32>
    %40 = arith.mulf %28, %39 : vector<2x32xf32>
    %41 = arith.addf %37, %40 : vector<2x32xf32>
    %42 = math.tanh %41 : vector<2x32xf32>
    %43 = vector.extract_strided_slice %19 {offsets = [0, 0], sizes = [2, 32], strides = [1, 1]} : vector<2x96xf32> to vector<2x32xf32>
    %44 = vector.extract_strided_slice %20 {offsets = [0, 128], sizes = [2, 32], strides = [1, 1]} : vector<2x256xf32> to vector<2x32xf32>
    %45 = arith.addf %43, %44 : vector<2x32xf32>
    %46 = arith.negf %45 : vector<2x32xf32>
    %47 = math.exp %46 : vector<2x32xf32>
    %cst_19 = arith.constant 1.000000e+00 : f32
    %48 = vector.broadcast %cst_19 : f32 to vector<2x32xf32>
    %49 = arith.addf %48, %47 : vector<2x32xf32>
    %50 = arith.divf %48, %49 : vector<2x32xf32>
    %51 = vector.extract_strided_slice %19 {offsets = [0, 32], sizes = [2, 32], strides = [1, 1]} : vector<2x96xf32> to vector<2x32xf32>
    %52 = vector.extract_strided_slice %20 {offsets = [0, 160], sizes = [2, 32], strides = [1, 1]} : vector<2x256xf32> to vector<2x32xf32>
    %53 = arith.addf %51, %52 : vector<2x32xf32>
    %54 = arith.negf %53 : vector<2x32xf32>
    %55 = math.exp %54 : vector<2x32xf32>
    %cst_20 = arith.constant 1.000000e+00 : f32
    %56 = vector.broadcast %cst_20 : f32 to vector<2x32xf32>
    %57 = arith.addf %56, %55 : vector<2x32xf32>
    %58 = arith.divf %56, %57 : vector<2x32xf32>
    %59 = vector.extract_strided_slice %19 {offsets = [0, 64], sizes = [2, 32], strides = [1, 1]} : vector<2x96xf32> to vector<2x32xf32>
    %60 = vector.extract_strided_slice %20 {offsets = [0, 192], sizes = [2, 32], strides = [1, 1]} : vector<2x256xf32> to vector<2x32xf32>
    %61 = arith.addf %60, %13 : vector<2x32xf32>
    %62 = arith.mulf %50, %61 : vector<2x32xf32>
    %63 = arith.addf %59, %62 : vector<2x32xf32>
    %64 = math.tanh %63 : vector<2x32xf32>
    %65 = vector.extract_strided_slice %17 {offsets = [0, 0], sizes = [2, 32], strides = [1, 1]} : vector<2x64xf32> to vector<2x32xf32>
    %66 = vector.extract_strided_slice %17 {offsets = [0, 32], sizes = [2, 32], strides = [1, 1]} : vector<2x64xf32> to vector<2x32xf32>
    %67 = arith.subf %65, %42 : vector<2x32xf32>
    %68 = arith.mulf %36, %67 : vector<2x32xf32>
    %69 = arith.addf %42, %68 : vector<2x32xf32>
    %70 = arith.subf %66, %64 : vector<2x32xf32>
    %71 = arith.mulf %58, %70 : vector<2x32xf32>
    %72 = arith.addf %64, %71 : vector<2x32xf32>
    %c0_i32 = arith.constant 0 : i32
    %73 = vector.broadcast %c0_i32 : i32 to vector<2x32xi32>
    %74 = arith.cmpi sgt, %16, %73 : vector<2x32xi32>
    %c7_i32 = arith.constant 7 : i32
    %75 = vector.broadcast %c7_i32 : i32 to vector<2x32xi32>
    %76 = arith.cmpi sgt, %16, %75 : vector<2x32xi32>
    %cst_21 = arith.constant 0.000000e+00 : f32
    %77 = vector.broadcast %cst_21 : f32 to vector<2x32xf32>
    %78 = arith.select %74, %69, %77 : vector<2x32xi1>, vector<2x32xf32>
    %c0_22 = arith.constant 0 : index
    %c0_23 = arith.constant 0 : index
    %79 = vector.load %arg9[%c0_22, %c0_23] : memref<16x64xf32, #tpu.memory_space<vmem>>, vector<2x32xf32>
    tpu.vector_store %arg9[%c0_22, %c0_23], %78 {strides = array<i32>} : memref<16x64xf32, #tpu.memory_space<vmem>>, vector<2x32xf32>,
    %cst_24 = arith.constant 0.000000e+00 : f32
    %80 = vector.broadcast %cst_24 : f32 to vector<2x32xf32>
    %81 = arith.select %76, %72, %80 : vector<2x32xi1>, vector<2x32xf32>
    %c14_25 = arith.constant 14 : index
    %c32 = arith.constant 32 : index
    %82 = vector.load %arg9[%c14_25, %c32] : memref<16x64xf32, #tpu.memory_space<vmem>>, vector<2x32xf32>
    tpu.vector_store %arg9[%c14_25, %c32], %81 {strides = array<i32>} : memref<16x64xf32, #tpu.memory_space<vmem>>, vector<2x32xf32>,
    %83 = arith.select %74, %69, %65 : vector<2x32xi1>, vector<2x32xf32>
    %84 = arith.select %76, %72, %66 : vector<2x32xi1>, vector<2x32xf32>
    %85 = tpu.concatenate %83, %84 in 1 : vector<2x32xf32>, vector<2x32xf32> -> vector<2x64xf32>
    %c2 = arith.constant 2 : index
    %c0_26 = arith.constant 0 : index
    %86 = vector.load %arg8[%c2, %c0_26] : memref<16x256xf32, #tpu.memory_space<vmem>>, vector<2x96xf32>
    %c12 = arith.constant 12 : index
    %c128_27 = arith.constant 128 : index
    %87 = vector.load %arg8[%c12, %c128_27] : memref<16x256xf32, #tpu.memory_space<vmem>>, vector<2x96xf32>
    %cst_28 = arith.constant dense<0.000000e+00> : vector<2x256xf32>
    %88 = tpu.matmul %85, %7, %cst_28 {dimension_numbers = #tpu.dot_dimension_numbers<[1], [0], [0], [1], [0, 0, 1, 1], [], []>} : vector<2x64xf32>, vector<64x256xf32>, vector<2x256xf32> -> vector<2x256xf32>
    %89 = vector.extract_strided_slice %86 {offsets = [0, 0], sizes = [2, 32], strides = [1, 1]} : vector<2x96xf32> to vector<2x32xf32>
    %90 = vector.extract_strided_slice %88 {offsets = [0, 0], sizes = [2, 32], strides = [1, 1]} : vector<2x256xf32> to vector<2x32xf32>
    %91 = arith.addf %89, %90 : vector<2x32xf32>
    %92 = arith.negf %91 : vector<2x32xf32>
    %93 = math.exp %92 : vector<2x32xf32>
    %cst_29 = arith.constant 1.000000e+00 : f32
    %94 = vector.broadcast %cst_29 : f32 to vector<2x32xf32>
    %95 = arith.addf %94, %93 : vector<2x32xf32>
    %96 = arith.divf %94, %95 : vector<2x32xf32>
    %97 = vector.extract_strided_slice %86 {offsets = [0, 32], sizes = [2, 32], strides = [1, 1]} : vector<2x96xf32> to vector<2x32xf32>
    %98 = vector.extract_strided_slice %88 {offsets = [0, 32], sizes = [2, 32], strides = [1, 1]} : vector<2x256xf32> to vector<2x32xf32>
    %99 = arith.addf %97, %98 : vector<2x32xf32>
    %100 = arith.negf %99 : vector<2x32xf32>
    %101 = math.exp %100 : vector<2x32xf32>
    %cst_30 = arith.constant 1.000000e+00 : f32
    %102 = vector.broadcast %cst_30 : f32 to vector<2x32xf32>
    %103 = arith.addf %102, %101 : vector<2x32xf32>
    %104 = arith.divf %102, %103 : vector<2x32xf32>
    %105 = vector.extract_strided_slice %86 {offsets = [0, 64], sizes = [2, 32], strides = [1, 1]} : vector<2x96xf32> to vector<2x32xf32>
    %106 = vector.extract_strided_slice %88 {offsets = [0, 64], sizes = [2, 32], strides = [1, 1]} : vector<2x256xf32> to vector<2x32xf32>
    %107 = arith.addf %106, %10 : vector<2x32xf32>
    %108 = arith.mulf %96, %107 : vector<2x32xf32>
    %109 = arith.addf %105, %108 : vector<2x32xf32>
    %110 = math.tanh %109 : vector<2x32xf32>
    %111 = vector.extract_strided_slice %87 {offsets = [0, 0], sizes = [2, 32], strides = [1, 1]} : vector<2x96xf32> to vector<2x32xf32>
    %112 = vector.extract_strided_slice %88 {offsets = [0, 128], sizes = [2, 32], strides = [1, 1]} : vector<2x256xf32> to vector<2x32xf32>
    %113 = arith.addf %111, %112 : vector<2x32xf32>
    %114 = arith.negf %113 : vector<2x32xf32>
    %115 = math.exp %114 : vector<2x32xf32>
    %cst_31 = arith.constant 1.000000e+00 : f32
    %116 = vector.broadcast %cst_31 : f32 to vector<2x32xf32>
    %117 = arith.addf %116, %115 : vector<2x32xf32>
    %118 = arith.divf %116, %117 : vector<2x32xf32>
    %119 = vector.extract_strided_slice %87 {offsets = [0, 32], sizes = [2, 32], strides = [1, 1]} : vector<2x96xf32> to vector<2x32xf32>
    %120 = vector.extract_strided_slice %88 {offsets = [0, 160], sizes = [2, 32], strides = [1, 1]} : vector<2x256xf32> to vector<2x32xf32>
    %121 = arith.addf %119, %120 : vector<2x32xf32>
    %122 = arith.negf %121 : vector<2x32xf32>
    %123 = math.exp %122 : vector<2x32xf32>
    %cst_32 = arith.constant 1.000000e+00 : f32
    %124 = vector.broadcast %cst_32 : f32 to vector<2x32xf32>
    %125 = arith.addf %124, %123 : vector<2x32xf32>
    %126 = arith.divf %124, %125 : vector<2x32xf32>
    %127 = vector.extract_strided_slice %87 {offsets = [0, 64], sizes = [2, 32], strides = [1, 1]} : vector<2x96xf32> to vector<2x32xf32>
    %128 = vector.extract_strided_slice %88 {offsets = [0, 192], sizes = [2, 32], strides = [1, 1]} : vector<2x256xf32> to vector<2x32xf32>
    %129 = arith.addf %128, %13 : vector<2x32xf32>
    %130 = arith.mulf %118, %129 : vector<2x32xf32>
    %131 = arith.addf %127, %130 : vector<2x32xf32>
    %132 = math.tanh %131 : vector<2x32xf32>
    %133 = vector.extract_strided_slice %85 {offsets = [0, 0], sizes = [2, 32], strides = [1, 1]} : vector<2x64xf32> to vector<2x32xf32>
    %134 = vector.extract_strided_slice %85 {offsets = [0, 32], sizes = [2, 32], strides = [1, 1]} : vector<2x64xf32> to vector<2x32xf32>
    %135 = arith.subf %133, %110 : vector<2x32xf32>
    %136 = arith.mulf %104, %135 : vector<2x32xf32>
    %137 = arith.addf %110, %136 : vector<2x32xf32>
    %138 = arith.subf %134, %132 : vector<2x32xf32>
    %139 = arith.mulf %126, %138 : vector<2x32xf32>
    %140 = arith.addf %132, %139 : vector<2x32xf32>
    %c1_i32 = arith.constant 1 : i32
    %141 = vector.broadcast %c1_i32 : i32 to vector<2x32xi32>
    %142 = arith.cmpi sgt, %16, %141 : vector<2x32xi32>
    %c6_i32 = arith.constant 6 : i32
    %143 = vector.broadcast %c6_i32 : i32 to vector<2x32xi32>
    %144 = arith.cmpi sgt, %16, %143 : vector<2x32xi32>
    %cst_33 = arith.constant 0.000000e+00 : f32
    %145 = vector.broadcast %cst_33 : f32 to vector<2x32xf32>
    %146 = arith.select %142, %137, %145 : vector<2x32xi1>, vector<2x32xf32>
    %c2_34 = arith.constant 2 : index
    %c0_35 = arith.constant 0 : index
    %147 = vector.load %arg9[%c2_34, %c0_35] : memref<16x64xf32, #tpu.memory_space<vmem>>, vector<2x32xf32>
    tpu.vector_store %arg9[%c2_34, %c0_35], %146 {strides = array<i32>} : memref<16x64xf32, #tpu.memory_space<vmem>>, vector<2x32xf32>,
    %cst_36 = arith.constant 0.000000e+00 : f32
    %148 = vector.broadcast %cst_36 : f32 to vector<2x32xf32>
    %149 = arith.select %144, %140, %148 : vector<2x32xi1>, vector<2x32xf32>
    %c12_37 = arith.constant 12 : index
    %c32_38 = arith.constant 32 : index
    %150 = vector.load %arg9[%c12_37, %c32_38] : memref<16x64xf32, #tpu.memory_space<vmem>>, vector<2x32xf32>
    tpu.vector_store %arg9[%c12_37, %c32_38], %149 {strides = array<i32>} : memref<16x64xf32, #tpu.memory_space<vmem>>, vector<2x32xf32>,
    %151 = arith.select %142, %137, %133 : vector<2x32xi1>, vector<2x32xf32>
    %152 = arith.select %144, %140, %134 : vector<2x32xi1>, vector<2x32xf32>
    %153 = tpu.concatenate %151, %152 in 1 : vector<2x32xf32>, vector<2x32xf32> -> vector<2x64xf32>
    %c4 = arith.constant 4 : index
    %c0_39 = arith.constant 0 : index
    %154 = vector.load %arg8[%c4, %c0_39] : memref<16x256xf32, #tpu.memory_space<vmem>>, vector<2x96xf32>
    %c10 = arith.constant 10 : index
    %c128_40 = arith.constant 128 : index
    %155 = vector.load %arg8[%c10, %c128_40] : memref<16x256xf32, #tpu.memory_space<vmem>>, vector<2x96xf32>
    %cst_41 = arith.constant dense<0.000000e+00> : vector<2x256xf32>
    %156 = tpu.matmul %153, %7, %cst_41 {dimension_numbers = #tpu.dot_dimension_numbers<[1], [0], [0], [1], [0, 0, 1, 1], [], []>} : vector<2x64xf32>, vector<64x256xf32>, vector<2x256xf32> -> vector<2x256xf32>
    %157 = vector.extract_strided_slice %154 {offsets = [0, 0], sizes = [2, 32], strides = [1, 1]} : vector<2x96xf32> to vector<2x32xf32>
    %158 = vector.extract_strided_slice %156 {offsets = [0, 0], sizes = [2, 32], strides = [1, 1]} : vector<2x256xf32> to vector<2x32xf32>
    %159 = arith.addf %157, %158 : vector<2x32xf32>
    %160 = arith.negf %159 : vector<2x32xf32>
    %161 = math.exp %160 : vector<2x32xf32>
    %cst_42 = arith.constant 1.000000e+00 : f32
    %162 = vector.broadcast %cst_42 : f32 to vector<2x32xf32>
    %163 = arith.addf %162, %161 : vector<2x32xf32>
    %164 = arith.divf %162, %163 : vector<2x32xf32>
    %165 = vector.extract_strided_slice %154 {offsets = [0, 32], sizes = [2, 32], strides = [1, 1]} : vector<2x96xf32> to vector<2x32xf32>
    %166 = vector.extract_strided_slice %156 {offsets = [0, 32], sizes = [2, 32], strides = [1, 1]} : vector<2x256xf32> to vector<2x32xf32>
    %167 = arith.addf %165, %166 : vector<2x32xf32>
    %168 = arith.negf %167 : vector<2x32xf32>
    %169 = math.exp %168 : vector<2x32xf32>
    %cst_43 = arith.constant 1.000000e+00 : f32
    %170 = vector.broadcast %cst_43 : f32 to vector<2x32xf32>
    %171 = arith.addf %170, %169 : vector<2x32xf32>
    %172 = arith.divf %170, %171 : vector<2x32xf32>
    %173 = vector.extract_strided_slice %154 {offsets = [0, 64], sizes = [2, 32], strides = [1, 1]} : vector<2x96xf32> to vector<2x32xf32>
    %174 = vector.extract_strided_slice %156 {offsets = [0, 64], sizes = [2, 32], strides = [1, 1]} : vector<2x256xf32> to vector<2x32xf32>
    %175 = arith.addf %174, %10 : vector<2x32xf32>
    %176 = arith.mulf %164, %175 : vector<2x32xf32>
    %177 = arith.addf %173, %176 : vector<2x32xf32>
    %178 = math.tanh %177 : vector<2x32xf32>
    %179 = vector.extract_strided_slice %155 {offsets = [0, 0], sizes = [2, 32], strides = [1, 1]} : vector<2x96xf32> to vector<2x32xf32>
    %180 = vector.extract_strided_slice %156 {offsets = [0, 128], sizes = [2, 32], strides = [1, 1]} : vector<2x256xf32> to vector<2x32xf32>
    %181 = arith.addf %179, %180 : vector<2x32xf32>
    %182 = arith.negf %181 : vector<2x32xf32>
    %183 = math.exp %182 : vector<2x32xf32>
    %cst_44 = arith.constant 1.000000e+00 : f32
    %184 = vector.broadcast %cst_44 : f32 to vector<2x32xf32>
    %185 = arith.addf %184, %183 : vector<2x32xf32>
    %186 = arith.divf %184, %185 : vector<2x32xf32>
    %187 = vector.extract_strided_slice %155 {offsets = [0, 32], sizes = [2, 32], strides = [1, 1]} : vector<2x96xf32> to vector<2x32xf32>
    %188 = vector.extract_strided_slice %156 {offsets = [0, 160], sizes = [2, 32], strides = [1, 1]} : vector<2x256xf32> to vector<2x32xf32>
    %189 = arith.addf %187, %188 : vector<2x32xf32>
    %190 = arith.negf %189 : vector<2x32xf32>
    %191 = math.exp %190 : vector<2x32xf32>
    %cst_45 = arith.constant 1.000000e+00 : f32
    %192 = vector.broadcast %cst_45 : f32 to vector<2x32xf32>
    %193 = arith.addf %192, %191 : vector<2x32xf32>
    %194 = arith.divf %192, %193 : vector<2x32xf32>
    %195 = vector.extract_strided_slice %155 {offsets = [0, 64], sizes = [2, 32], strides = [1, 1]} : vector<2x96xf32> to vector<2x32xf32>
    %196 = vector.extract_strided_slice %156 {offsets = [0, 192], sizes = [2, 32], strides = [1, 1]} : vector<2x256xf32> to vector<2x32xf32>
    %197 = arith.addf %196, %13 : vector<2x32xf32>
    %198 = arith.mulf %186, %197 : vector<2x32xf32>
    %199 = arith.addf %195, %198 : vector<2x32xf32>
    %200 = math.tanh %199 : vector<2x32xf32>
    %201 = vector.extract_strided_slice %153 {offsets = [0, 0], sizes = [2, 32], strides = [1, 1]} : vector<2x64xf32> to vector<2x32xf32>
    %202 = vector.extract_strided_slice %153 {offsets = [0, 32], sizes = [2, 32], strides = [1, 1]} : vector<2x64xf32> to vector<2x32xf32>
    %203 = arith.subf %201, %178 : vector<2x32xf32>
    %204 = arith.mulf %172, %203 : vector<2x32xf32>
    %205 = arith.addf %178, %204 : vector<2x32xf32>
    %206 = arith.subf %202, %200 : vector<2x32xf32>
    %207 = arith.mulf %194, %206 : vector<2x32xf32>
    %208 = arith.addf %200, %207 : vector<2x32xf32>
    %c2_i32 = arith.constant 2 : i32
    %209 = vector.broadcast %c2_i32 : i32 to vector<2x32xi32>
    %210 = arith.cmpi sgt, %16, %209 : vector<2x32xi32>
    %c5_i32 = arith.constant 5 : i32
    %211 = vector.broadcast %c5_i32 : i32 to vector<2x32xi32>
    %212 = arith.cmpi sgt, %16, %211 : vector<2x32xi32>
    %cst_46 = arith.constant 0.000000e+00 : f32
    %213 = vector.broadcast %cst_46 : f32 to vector<2x32xf32>
    %214 = arith.select %210, %205, %213 : vector<2x32xi1>, vector<2x32xf32>
    %c4_47 = arith.constant 4 : index
    %c0_48 = arith.constant 0 : index
    %215 = vector.load %arg9[%c4_47, %c0_48] : memref<16x64xf32, #tpu.memory_space<vmem>>, vector<2x32xf32>
    tpu.vector_store %arg9[%c4_47, %c0_48], %214 {strides = array<i32>} : memref<16x64xf32, #tpu.memory_space<vmem>>, vector<2x32xf32>,
    %cst_49 = arith.constant 0.000000e+00 : f32
    %216 = vector.broadcast %cst_49 : f32 to vector<2x32xf32>
    %217 = arith.select %212, %208, %216 : vector<2x32xi1>, vector<2x32xf32>
    %c10_50 = arith.constant 10 : index
    %c32_51 = arith.constant 32 : index
    %218 = vector.load %arg9[%c10_50, %c32_51] : memref<16x64xf32, #tpu.memory_space<vmem>>, vector<2x32xf32>
    tpu.vector_store %arg9[%c10_50, %c32_51], %217 {strides = array<i32>} : memref<16x64xf32, #tpu.memory_space<vmem>>, vector<2x32xf32>,
    %219 = arith.select %210, %205, %201 : vector<2x32xi1>, vector<2x32xf32>
    %220 = arith.select %212, %208, %202 : vector<2x32xi1>, vector<2x32xf32>
    %221 = tpu.concatenate %219, %220 in 1 : vector<2x32xf32>, vector<2x32xf32> -> vector<2x64xf32>
    %c6 = arith.constant 6 : index
    %c0_52 = arith.constant 0 : index
    %222 = vector.load %arg8[%c6, %c0_52] : memref<16x256xf32, #tpu.memory_space<vmem>>, vector<2x96xf32>
    %c8 = arith.constant 8 : index
    %c128_53 = arith.constant 128 : index
    %223 = vector.load %arg8[%c8, %c128_53] : memref<16x256xf32, #tpu.memory_space<vmem>>, vector<2x96xf32>
    %cst_54 = arith.constant dense<0.000000e+00> : vector<2x256xf32>
    %224 = tpu.matmul %221, %7, %cst_54 {dimension_numbers = #tpu.dot_dimension_numbers<[1], [0], [0], [1], [0, 0, 1, 1], [], []>} : vector<2x64xf32>, vector<64x256xf32>, vector<2x256xf32> -> vector<2x256xf32>
    %225 = vector.extract_strided_slice %222 {offsets = [0, 0], sizes = [2, 32], strides = [1, 1]} : vector<2x96xf32> to vector<2x32xf32>
    %226 = vector.extract_strided_slice %224 {offsets = [0, 0], sizes = [2, 32], strides = [1, 1]} : vector<2x256xf32> to vector<2x32xf32>
    %227 = arith.addf %225, %226 : vector<2x32xf32>
    %228 = arith.negf %227 : vector<2x32xf32>
    %229 = math.exp %228 : vector<2x32xf32>
    %cst_55 = arith.constant 1.000000e+00 : f32
    %230 = vector.broadcast %cst_55 : f32 to vector<2x32xf32>
    %231 = arith.addf %230, %229 : vector<2x32xf32>
    %232 = arith.divf %230, %231 : vector<2x32xf32>
    %233 = vector.extract_strided_slice %222 {offsets = [0, 32], sizes = [2, 32], strides = [1, 1]} : vector<2x96xf32> to vector<2x32xf32>
    %234 = vector.extract_strided_slice %224 {offsets = [0, 32], sizes = [2, 32], strides = [1, 1]} : vector<2x256xf32> to vector<2x32xf32>
    %235 = arith.addf %233, %234 : vector<2x32xf32>
    %236 = arith.negf %235 : vector<2x32xf32>
    %237 = math.exp %236 : vector<2x32xf32>
    %cst_56 = arith.constant 1.000000e+00 : f32
    %238 = vector.broadcast %cst_56 : f32 to vector<2x32xf32>
    %239 = arith.addf %238, %237 : vector<2x32xf32>
    %240 = arith.divf %238, %239 : vector<2x32xf32>
    %241 = vector.extract_strided_slice %222 {offsets = [0, 64], sizes = [2, 32], strides = [1, 1]} : vector<2x96xf32> to vector<2x32xf32>
    %242 = vector.extract_strided_slice %224 {offsets = [0, 64], sizes = [2, 32], strides = [1, 1]} : vector<2x256xf32> to vector<2x32xf32>
    %243 = arith.addf %242, %10 : vector<2x32xf32>
    %244 = arith.mulf %232, %243 : vector<2x32xf32>
    %245 = arith.addf %241, %244 : vector<2x32xf32>
    %246 = math.tanh %245 : vector<2x32xf32>
    %247 = vector.extract_strided_slice %223 {offsets = [0, 0], sizes = [2, 32], strides = [1, 1]} : vector<2x96xf32> to vector<2x32xf32>
    %248 = vector.extract_strided_slice %224 {offsets = [0, 128], sizes = [2, 32], strides = [1, 1]} : vector<2x256xf32> to vector<2x32xf32>
    %249 = arith.addf %247, %248 : vector<2x32xf32>
    %250 = arith.negf %249 : vector<2x32xf32>
    %251 = math.exp %250 : vector<2x32xf32>
    %cst_57 = arith.constant 1.000000e+00 : f32
    %252 = vector.broadcast %cst_57 : f32 to vector<2x32xf32>
    %253 = arith.addf %252, %251 : vector<2x32xf32>
    %254 = arith.divf %252, %253 : vector<2x32xf32>
    %255 = vector.extract_strided_slice %223 {offsets = [0, 32], sizes = [2, 32], strides = [1, 1]} : vector<2x96xf32> to vector<2x32xf32>
    %256 = vector.extract_strided_slice %224 {offsets = [0, 160], sizes = [2, 32], strides = [1, 1]} : vector<2x256xf32> to vector<2x32xf32>
    %257 = arith.addf %255, %256 : vector<2x32xf32>
    %258 = arith.negf %257 : vector<2x32xf32>
    %259 = math.exp %258 : vector<2x32xf32>
    %cst_58 = arith.constant 1.000000e+00 : f32
    %260 = vector.broadcast %cst_58 : f32 to vector<2x32xf32>
    %261 = arith.addf %260, %259 : vector<2x32xf32>
    %262 = arith.divf %260, %261 : vector<2x32xf32>
    %263 = vector.extract_strided_slice %223 {offsets = [0, 64], sizes = [2, 32], strides = [1, 1]} : vector<2x96xf32> to vector<2x32xf32>
    %264 = vector.extract_strided_slice %224 {offsets = [0, 192], sizes = [2, 32], strides = [1, 1]} : vector<2x256xf32> to vector<2x32xf32>
    %265 = arith.addf %264, %13 : vector<2x32xf32>
    %266 = arith.mulf %254, %265 : vector<2x32xf32>
    %267 = arith.addf %263, %266 : vector<2x32xf32>
    %268 = math.tanh %267 : vector<2x32xf32>
    %269 = vector.extract_strided_slice %221 {offsets = [0, 0], sizes = [2, 32], strides = [1, 1]} : vector<2x64xf32> to vector<2x32xf32>
    %270 = vector.extract_strided_slice %221 {offsets = [0, 32], sizes = [2, 32], strides = [1, 1]} : vector<2x64xf32> to vector<2x32xf32>
    %271 = arith.subf %269, %246 : vector<2x32xf32>
    %272 = arith.mulf %240, %271 : vector<2x32xf32>
    %273 = arith.addf %246, %272 : vector<2x32xf32>
    %274 = arith.subf %270, %268 : vector<2x32xf32>
    %275 = arith.mulf %262, %274 : vector<2x32xf32>
    %276 = arith.addf %268, %275 : vector<2x32xf32>
    %c3_i32 = arith.constant 3 : i32
    %277 = vector.broadcast %c3_i32 : i32 to vector<2x32xi32>
    %278 = arith.cmpi sgt, %16, %277 : vector<2x32xi32>
    %c4_i32 = arith.constant 4 : i32
    %279 = vector.broadcast %c4_i32 : i32 to vector<2x32xi32>
    %280 = arith.cmpi sgt, %16, %279 : vector<2x32xi32>
    %cst_59 = arith.constant 0.000000e+00 : f32
    %281 = vector.broadcast %cst_59 : f32 to vector<2x32xf32>
    %282 = arith.select %278, %273, %281 : vector<2x32xi1>, vector<2x32xf32>
    %c6_60 = arith.constant 6 : index
    %c0_61 = arith.constant 0 : index
    %283 = vector.load %arg9[%c6_60, %c0_61] : memref<16x64xf32, #tpu.memory_space<vmem>>, vector<2x32xf32>
    tpu.vector_store %arg9[%c6_60, %c0_61], %282 {strides = array<i32>} : memref<16x64xf32, #tpu.memory_space<vmem>>, vector<2x32xf32>,
    %cst_62 = arith.constant 0.000000e+00 : f32
    %284 = vector.broadcast %cst_62 : f32 to vector<2x32xf32>
    %285 = arith.select %280, %276, %284 : vector<2x32xi1>, vector<2x32xf32>
    %c8_63 = arith.constant 8 : index
    %c32_64 = arith.constant 32 : index
    %286 = vector.load %arg9[%c8_63, %c32_64] : memref<16x64xf32, #tpu.memory_space<vmem>>, vector<2x32xf32>
    tpu.vector_store %arg9[%c8_63, %c32_64], %285 {strides = array<i32>} : memref<16x64xf32, #tpu.memory_space<vmem>>, vector<2x32xf32>,
    %287 = arith.select %278, %273, %269 : vector<2x32xi1>, vector<2x32xf32>
    %288 = arith.select %280, %276, %270 : vector<2x32xi1>, vector<2x32xf32>
    %289 = tpu.concatenate %287, %288 in 1 : vector<2x32xf32>, vector<2x32xf32> -> vector<2x64xf32>
    %c8_65 = arith.constant 8 : index
    %c0_66 = arith.constant 0 : index
    %290 = vector.load %arg8[%c8_65, %c0_66] : memref<16x256xf32, #tpu.memory_space<vmem>>, vector<2x96xf32>
    %c6_67 = arith.constant 6 : index
    %c128_68 = arith.constant 128 : index
    %291 = vector.load %arg8[%c6_67, %c128_68] : memref<16x256xf32, #tpu.memory_space<vmem>>, vector<2x96xf32>
    %cst_69 = arith.constant dense<0.000000e+00> : vector<2x256xf32>
    %292 = tpu.matmul %289, %7, %cst_69 {dimension_numbers = #tpu.dot_dimension_numbers<[1], [0], [0], [1], [0, 0, 1, 1], [], []>} : vector<2x64xf32>, vector<64x256xf32>, vector<2x256xf32> -> vector<2x256xf32>
    %293 = vector.extract_strided_slice %290 {offsets = [0, 0], sizes = [2, 32], strides = [1, 1]} : vector<2x96xf32> to vector<2x32xf32>
    %294 = vector.extract_strided_slice %292 {offsets = [0, 0], sizes = [2, 32], strides = [1, 1]} : vector<2x256xf32> to vector<2x32xf32>
    %295 = arith.addf %293, %294 : vector<2x32xf32>
    %296 = arith.negf %295 : vector<2x32xf32>
    %297 = math.exp %296 : vector<2x32xf32>
    %cst_70 = arith.constant 1.000000e+00 : f32
    %298 = vector.broadcast %cst_70 : f32 to vector<2x32xf32>
    %299 = arith.addf %298, %297 : vector<2x32xf32>
    %300 = arith.divf %298, %299 : vector<2x32xf32>
    %301 = vector.extract_strided_slice %290 {offsets = [0, 32], sizes = [2, 32], strides = [1, 1]} : vector<2x96xf32> to vector<2x32xf32>
    %302 = vector.extract_strided_slice %292 {offsets = [0, 32], sizes = [2, 32], strides = [1, 1]} : vector<2x256xf32> to vector<2x32xf32>
    %303 = arith.addf %301, %302 : vector<2x32xf32>
    %304 = arith.negf %303 : vector<2x32xf32>
    %305 = math.exp %304 : vector<2x32xf32>
    %cst_71 = arith.constant 1.000000e+00 : f32
    %306 = vector.broadcast %cst_71 : f32 to vector<2x32xf32>
    %307 = arith.addf %306, %305 : vector<2x32xf32>
    %308 = arith.divf %306, %307 : vector<2x32xf32>
    %309 = vector.extract_strided_slice %290 {offsets = [0, 64], sizes = [2, 32], strides = [1, 1]} : vector<2x96xf32> to vector<2x32xf32>
    %310 = vector.extract_strided_slice %292 {offsets = [0, 64], sizes = [2, 32], strides = [1, 1]} : vector<2x256xf32> to vector<2x32xf32>
    %311 = arith.addf %310, %10 : vector<2x32xf32>
    %312 = arith.mulf %300, %311 : vector<2x32xf32>
    %313 = arith.addf %309, %312 : vector<2x32xf32>
    %314 = math.tanh %313 : vector<2x32xf32>
    %315 = vector.extract_strided_slice %291 {offsets = [0, 0], sizes = [2, 32], strides = [1, 1]} : vector<2x96xf32> to vector<2x32xf32>
    %316 = vector.extract_strided_slice %292 {offsets = [0, 128], sizes = [2, 32], strides = [1, 1]} : vector<2x256xf32> to vector<2x32xf32>
    %317 = arith.addf %315, %316 : vector<2x32xf32>
    %318 = arith.negf %317 : vector<2x32xf32>
    %319 = math.exp %318 : vector<2x32xf32>
    %cst_72 = arith.constant 1.000000e+00 : f32
    %320 = vector.broadcast %cst_72 : f32 to vector<2x32xf32>
    %321 = arith.addf %320, %319 : vector<2x32xf32>
    %322 = arith.divf %320, %321 : vector<2x32xf32>
    %323 = vector.extract_strided_slice %291 {offsets = [0, 32], sizes = [2, 32], strides = [1, 1]} : vector<2x96xf32> to vector<2x32xf32>
    %324 = vector.extract_strided_slice %292 {offsets = [0, 160], sizes = [2, 32], strides = [1, 1]} : vector<2x256xf32> to vector<2x32xf32>
    %325 = arith.addf %323, %324 : vector<2x32xf32>
    %326 = arith.negf %325 : vector<2x32xf32>
    %327 = math.exp %326 : vector<2x32xf32>
    %cst_73 = arith.constant 1.000000e+00 : f32
    %328 = vector.broadcast %cst_73 : f32 to vector<2x32xf32>
    %329 = arith.addf %328, %327 : vector<2x32xf32>
    %330 = arith.divf %328, %329 : vector<2x32xf32>
    %331 = vector.extract_strided_slice %291 {offsets = [0, 64], sizes = [2, 32], strides = [1, 1]} : vector<2x96xf32> to vector<2x32xf32>
    %332 = vector.extract_strided_slice %292 {offsets = [0, 192], sizes = [2, 32], strides = [1, 1]} : vector<2x256xf32> to vector<2x32xf32>
    %333 = arith.addf %332, %13 : vector<2x32xf32>
    %334 = arith.mulf %322, %333 : vector<2x32xf32>
    %335 = arith.addf %331, %334 : vector<2x32xf32>
    %336 = math.tanh %335 : vector<2x32xf32>
    %337 = vector.extract_strided_slice %289 {offsets = [0, 0], sizes = [2, 32], strides = [1, 1]} : vector<2x64xf32> to vector<2x32xf32>
    %338 = vector.extract_strided_slice %289 {offsets = [0, 32], sizes = [2, 32], strides = [1, 1]} : vector<2x64xf32> to vector<2x32xf32>
    %339 = arith.subf %337, %314 : vector<2x32xf32>
    %340 = arith.mulf %308, %339 : vector<2x32xf32>
    %341 = arith.addf %314, %340 : vector<2x32xf32>
    %342 = arith.subf %338, %336 : vector<2x32xf32>
    %343 = arith.mulf %330, %342 : vector<2x32xf32>
    %344 = arith.addf %336, %343 : vector<2x32xf32>
    %c4_i32_74 = arith.constant 4 : i32
    %345 = vector.broadcast %c4_i32_74 : i32 to vector<2x32xi32>
    %346 = arith.cmpi sgt, %16, %345 : vector<2x32xi32>
    %c3_i32_75 = arith.constant 3 : i32
    %347 = vector.broadcast %c3_i32_75 : i32 to vector<2x32xi32>
    %348 = arith.cmpi sgt, %16, %347 : vector<2x32xi32>
    %cst_76 = arith.constant 0.000000e+00 : f32
    %349 = vector.broadcast %cst_76 : f32 to vector<2x32xf32>
    %350 = arith.select %346, %341, %349 : vector<2x32xi1>, vector<2x32xf32>
    %c8_77 = arith.constant 8 : index
    %c0_78 = arith.constant 0 : index
    %351 = vector.load %arg9[%c8_77, %c0_78] : memref<16x64xf32, #tpu.memory_space<vmem>>, vector<2x32xf32>
    tpu.vector_store %arg9[%c8_77, %c0_78], %350 {strides = array<i32>} : memref<16x64xf32, #tpu.memory_space<vmem>>, vector<2x32xf32>,
    %cst_79 = arith.constant 0.000000e+00 : f32
    %352 = vector.broadcast %cst_79 : f32 to vector<2x32xf32>
    %353 = arith.select %348, %344, %352 : vector<2x32xi1>, vector<2x32xf32>
    %c6_80 = arith.constant 6 : index
    %c32_81 = arith.constant 32 : index
    %354 = vector.load %arg9[%c6_80, %c32_81] : memref<16x64xf32, #tpu.memory_space<vmem>>, vector<2x32xf32>
    tpu.vector_store %arg9[%c6_80, %c32_81], %353 {strides = array<i32>} : memref<16x64xf32, #tpu.memory_space<vmem>>, vector<2x32xf32>,
    %355 = arith.select %346, %341, %337 : vector<2x32xi1>, vector<2x32xf32>
    %356 = arith.select %348, %344, %338 : vector<2x32xi1>, vector<2x32xf32>
    %357 = tpu.concatenate %355, %356 in 1 : vector<2x32xf32>, vector<2x32xf32> -> vector<2x64xf32>
    %c10_82 = arith.constant 10 : index
    %c0_83 = arith.constant 0 : index
    %358 = vector.load %arg8[%c10_82, %c0_83] : memref<16x256xf32, #tpu.memory_space<vmem>>, vector<2x96xf32>
    %c4_84 = arith.constant 4 : index
    %c128_85 = arith.constant 128 : index
    %359 = vector.load %arg8[%c4_84, %c128_85] : memref<16x256xf32, #tpu.memory_space<vmem>>, vector<2x96xf32>
    %cst_86 = arith.constant dense<0.000000e+00> : vector<2x256xf32>
    %360 = tpu.matmul %357, %7, %cst_86 {dimension_numbers = #tpu.dot_dimension_numbers<[1], [0], [0], [1], [0, 0, 1, 1], [], []>} : vector<2x64xf32>, vector<64x256xf32>, vector<2x256xf32> -> vector<2x256xf32>
    %361 = vector.extract_strided_slice %358 {offsets = [0, 0], sizes = [2, 32], strides = [1, 1]} : vector<2x96xf32> to vector<2x32xf32>
    %362 = vector.extract_strided_slice %360 {offsets = [0, 0], sizes = [2, 32], strides = [1, 1]} : vector<2x256xf32> to vector<2x32xf32>
    %363 = arith.addf %361, %362 : vector<2x32xf32>
    %364 = arith.negf %363 : vector<2x32xf32>
    %365 = math.exp %364 : vector<2x32xf32>
    %cst_87 = arith.constant 1.000000e+00 : f32
    %366 = vector.broadcast %cst_87 : f32 to vector<2x32xf32>
    %367 = arith.addf %366, %365 : vector<2x32xf32>
    %368 = arith.divf %366, %367 : vector<2x32xf32>
    %369 = vector.extract_strided_slice %358 {offsets = [0, 32], sizes = [2, 32], strides = [1, 1]} : vector<2x96xf32> to vector<2x32xf32>
    %370 = vector.extract_strided_slice %360 {offsets = [0, 32], sizes = [2, 32], strides = [1, 1]} : vector<2x256xf32> to vector<2x32xf32>
    %371 = arith.addf %369, %370 : vector<2x32xf32>
    %372 = arith.negf %371 : vector<2x32xf32>
    %373 = math.exp %372 : vector<2x32xf32>
    %cst_88 = arith.constant 1.000000e+00 : f32
    %374 = vector.broadcast %cst_88 : f32 to vector<2x32xf32>
    %375 = arith.addf %374, %373 : vector<2x32xf32>
    %376 = arith.divf %374, %375 : vector<2x32xf32>
    %377 = vector.extract_strided_slice %358 {offsets = [0, 64], sizes = [2, 32], strides = [1, 1]} : vector<2x96xf32> to vector<2x32xf32>
    %378 = vector.extract_strided_slice %360 {offsets = [0, 64], sizes = [2, 32], strides = [1, 1]} : vector<2x256xf32> to vector<2x32xf32>
    %379 = arith.addf %378, %10 : vector<2x32xf32>
    %380 = arith.mulf %368, %379 : vector<2x32xf32>
    %381 = arith.addf %377, %380 : vector<2x32xf32>
    %382 = math.tanh %381 : vector<2x32xf32>
    %383 = vector.extract_strided_slice %359 {offsets = [0, 0], sizes = [2, 32], strides = [1, 1]} : vector<2x96xf32> to vector<2x32xf32>
    %384 = vector.extract_strided_slice %360 {offsets = [0, 128], sizes = [2, 32], strides = [1, 1]} : vector<2x256xf32> to vector<2x32xf32>
    %385 = arith.addf %383, %384 : vector<2x32xf32>
    %386 = arith.negf %385 : vector<2x32xf32>
    %387 = math.exp %386 : vector<2x32xf32>
    %cst_89 = arith.constant 1.000000e+00 : f32
    %388 = vector.broadcast %cst_89 : f32 to vector<2x32xf32>
    %389 = arith.addf %388, %387 : vector<2x32xf32>
    %390 = arith.divf %388, %389 : vector<2x32xf32>
    %391 = vector.extract_strided_slice %359 {offsets = [0, 32], sizes = [2, 32], strides = [1, 1]} : vector<2x96xf32> to vector<2x32xf32>
    %392 = vector.extract_strided_slice %360 {offsets = [0, 160], sizes = [2, 32], strides = [1, 1]} : vector<2x256xf32> to vector<2x32xf32>
    %393 = arith.addf %391, %392 : vector<2x32xf32>
    %394 = arith.negf %393 : vector<2x32xf32>
    %395 = math.exp %394 : vector<2x32xf32>
    %cst_90 = arith.constant 1.000000e+00 : f32
    %396 = vector.broadcast %cst_90 : f32 to vector<2x32xf32>
    %397 = arith.addf %396, %395 : vector<2x32xf32>
    %398 = arith.divf %396, %397 : vector<2x32xf32>
    %399 = vector.extract_strided_slice %359 {offsets = [0, 64], sizes = [2, 32], strides = [1, 1]} : vector<2x96xf32> to vector<2x32xf32>
    %400 = vector.extract_strided_slice %360 {offsets = [0, 192], sizes = [2, 32], strides = [1, 1]} : vector<2x256xf32> to vector<2x32xf32>
    %401 = arith.addf %400, %13 : vector<2x32xf32>
    %402 = arith.mulf %390, %401 : vector<2x32xf32>
    %403 = arith.addf %399, %402 : vector<2x32xf32>
    %404 = math.tanh %403 : vector<2x32xf32>
    %405 = vector.extract_strided_slice %357 {offsets = [0, 0], sizes = [2, 32], strides = [1, 1]} : vector<2x64xf32> to vector<2x32xf32>
    %406 = vector.extract_strided_slice %357 {offsets = [0, 32], sizes = [2, 32], strides = [1, 1]} : vector<2x64xf32> to vector<2x32xf32>
    %407 = arith.subf %405, %382 : vector<2x32xf32>
    %408 = arith.mulf %376, %407 : vector<2x32xf32>
    %409 = arith.addf %382, %408 : vector<2x32xf32>
    %410 = arith.subf %406, %404 : vector<2x32xf32>
    %411 = arith.mulf %398, %410 : vector<2x32xf32>
    %412 = arith.addf %404, %411 : vector<2x32xf32>
    %c5_i32_91 = arith.constant 5 : i32
    %413 = vector.broadcast %c5_i32_91 : i32 to vector<2x32xi32>
    %414 = arith.cmpi sgt, %16, %413 : vector<2x32xi32>
    %c2_i32_92 = arith.constant 2 : i32
    %415 = vector.broadcast %c2_i32_92 : i32 to vector<2x32xi32>
    %416 = arith.cmpi sgt, %16, %415 : vector<2x32xi32>
    %cst_93 = arith.constant 0.000000e+00 : f32
    %417 = vector.broadcast %cst_93 : f32 to vector<2x32xf32>
    %418 = arith.select %414, %409, %417 : vector<2x32xi1>, vector<2x32xf32>
    %c10_94 = arith.constant 10 : index
    %c0_95 = arith.constant 0 : index
    %419 = vector.load %arg9[%c10_94, %c0_95] : memref<16x64xf32, #tpu.memory_space<vmem>>, vector<2x32xf32>
    tpu.vector_store %arg9[%c10_94, %c0_95], %418 {strides = array<i32>} : memref<16x64xf32, #tpu.memory_space<vmem>>, vector<2x32xf32>,
    %cst_96 = arith.constant 0.000000e+00 : f32
    %420 = vector.broadcast %cst_96 : f32 to vector<2x32xf32>
    %421 = arith.select %416, %412, %420 : vector<2x32xi1>, vector<2x32xf32>
    %c4_97 = arith.constant 4 : index
    %c32_98 = arith.constant 32 : index
    %422 = vector.load %arg9[%c4_97, %c32_98] : memref<16x64xf32, #tpu.memory_space<vmem>>, vector<2x32xf32>
    tpu.vector_store %arg9[%c4_97, %c32_98], %421 {strides = array<i32>} : memref<16x64xf32, #tpu.memory_space<vmem>>, vector<2x32xf32>,
    %423 = arith.select %414, %409, %405 : vector<2x32xi1>, vector<2x32xf32>
    %424 = arith.select %416, %412, %406 : vector<2x32xi1>, vector<2x32xf32>
    %425 = tpu.concatenate %423, %424 in 1 : vector<2x32xf32>, vector<2x32xf32> -> vector<2x64xf32>
    %c12_99 = arith.constant 12 : index
    %c0_100 = arith.constant 0 : index
    %426 = vector.load %arg8[%c12_99, %c0_100] : memref<16x256xf32, #tpu.memory_space<vmem>>, vector<2x96xf32>
    %c2_101 = arith.constant 2 : index
    %c128_102 = arith.constant 128 : index
    %427 = vector.load %arg8[%c2_101, %c128_102] : memref<16x256xf32, #tpu.memory_space<vmem>>, vector<2x96xf32>
    %cst_103 = arith.constant dense<0.000000e+00> : vector<2x256xf32>
    %428 = tpu.matmul %425, %7, %cst_103 {dimension_numbers = #tpu.dot_dimension_numbers<[1], [0], [0], [1], [0, 0, 1, 1], [], []>} : vector<2x64xf32>, vector<64x256xf32>, vector<2x256xf32> -> vector<2x256xf32>
    %429 = vector.extract_strided_slice %426 {offsets = [0, 0], sizes = [2, 32], strides = [1, 1]} : vector<2x96xf32> to vector<2x32xf32>
    %430 = vector.extract_strided_slice %428 {offsets = [0, 0], sizes = [2, 32], strides = [1, 1]} : vector<2x256xf32> to vector<2x32xf32>
    %431 = arith.addf %429, %430 : vector<2x32xf32>
    %432 = arith.negf %431 : vector<2x32xf32>
    %433 = math.exp %432 : vector<2x32xf32>
    %cst_104 = arith.constant 1.000000e+00 : f32
    %434 = vector.broadcast %cst_104 : f32 to vector<2x32xf32>
    %435 = arith.addf %434, %433 : vector<2x32xf32>
    %436 = arith.divf %434, %435 : vector<2x32xf32>
    %437 = vector.extract_strided_slice %426 {offsets = [0, 32], sizes = [2, 32], strides = [1, 1]} : vector<2x96xf32> to vector<2x32xf32>
    %438 = vector.extract_strided_slice %428 {offsets = [0, 32], sizes = [2, 32], strides = [1, 1]} : vector<2x256xf32> to vector<2x32xf32>
    %439 = arith.addf %437, %438 : vector<2x32xf32>
    %440 = arith.negf %439 : vector<2x32xf32>
    %441 = math.exp %440 : vector<2x32xf32>
    %cst_105 = arith.constant 1.000000e+00 : f32
    %442 = vector.broadcast %cst_105 : f32 to vector<2x32xf32>
    %443 = arith.addf %442, %441 : vector<2x32xf32>
    %444 = arith.divf %442, %443 : vector<2x32xf32>
    %445 = vector.extract_strided_slice %426 {offsets = [0, 64], sizes = [2, 32], strides = [1, 1]} : vector<2x96xf32> to vector<2x32xf32>
    %446 = vector.extract_strided_slice %428 {offsets = [0, 64], sizes = [2, 32], strides = [1, 1]} : vector<2x256xf32> to vector<2x32xf32>
    %447 = arith.addf %446, %10 : vector<2x32xf32>
    %448 = arith.mulf %436, %447 : vector<2x32xf32>
    %449 = arith.addf %445, %448 : vector<2x32xf32>
    %450 = math.tanh %449 : vector<2x32xf32>
    %451 = vector.extract_strided_slice %427 {offsets = [0, 0], sizes = [2, 32], strides = [1, 1]} : vector<2x96xf32> to vector<2x32xf32>
    %452 = vector.extract_strided_slice %428 {offsets = [0, 128], sizes = [2, 32], strides = [1, 1]} : vector<2x256xf32> to vector<2x32xf32>
    %453 = arith.addf %451, %452 : vector<2x32xf32>
    %454 = arith.negf %453 : vector<2x32xf32>
    %455 = math.exp %454 : vector<2x32xf32>
    %cst_106 = arith.constant 1.000000e+00 : f32
    %456 = vector.broadcast %cst_106 : f32 to vector<2x32xf32>
    %457 = arith.addf %456, %455 : vector<2x32xf32>
    %458 = arith.divf %456, %457 : vector<2x32xf32>
    %459 = vector.extract_strided_slice %427 {offsets = [0, 32], sizes = [2, 32], strides = [1, 1]} : vector<2x96xf32> to vector<2x32xf32>
    %460 = vector.extract_strided_slice %428 {offsets = [0, 160], sizes = [2, 32], strides = [1, 1]} : vector<2x256xf32> to vector<2x32xf32>
    %461 = arith.addf %459, %460 : vector<2x32xf32>
    %462 = arith.negf %461 : vector<2x32xf32>
    %463 = math.exp %462 : vector<2x32xf32>
    %cst_107 = arith.constant 1.000000e+00 : f32
    %464 = vector.broadcast %cst_107 : f32 to vector<2x32xf32>
    %465 = arith.addf %464, %463 : vector<2x32xf32>
    %466 = arith.divf %464, %465 : vector<2x32xf32>
    %467 = vector.extract_strided_slice %427 {offsets = [0, 64], sizes = [2, 32], strides = [1, 1]} : vector<2x96xf32> to vector<2x32xf32>
    %468 = vector.extract_strided_slice %428 {offsets = [0, 192], sizes = [2, 32], strides = [1, 1]} : vector<2x256xf32> to vector<2x32xf32>
    %469 = arith.addf %468, %13 : vector<2x32xf32>
    %470 = arith.mulf %458, %469 : vector<2x32xf32>
    %471 = arith.addf %467, %470 : vector<2x32xf32>
    %472 = math.tanh %471 : vector<2x32xf32>
    %473 = vector.extract_strided_slice %425 {offsets = [0, 0], sizes = [2, 32], strides = [1, 1]} : vector<2x64xf32> to vector<2x32xf32>
    %474 = vector.extract_strided_slice %425 {offsets = [0, 32], sizes = [2, 32], strides = [1, 1]} : vector<2x64xf32> to vector<2x32xf32>
    %475 = arith.subf %473, %450 : vector<2x32xf32>
    %476 = arith.mulf %444, %475 : vector<2x32xf32>
    %477 = arith.addf %450, %476 : vector<2x32xf32>
    %478 = arith.subf %474, %472 : vector<2x32xf32>
    %479 = arith.mulf %466, %478 : vector<2x32xf32>
    %480 = arith.addf %472, %479 : vector<2x32xf32>
    %c6_i32_108 = arith.constant 6 : i32
    %481 = vector.broadcast %c6_i32_108 : i32 to vector<2x32xi32>
    %482 = arith.cmpi sgt, %16, %481 : vector<2x32xi32>
    %c1_i32_109 = arith.constant 1 : i32
    %483 = vector.broadcast %c1_i32_109 : i32 to vector<2x32xi32>
    %484 = arith.cmpi sgt, %16, %483 : vector<2x32xi32>
    %cst_110 = arith.constant 0.000000e+00 : f32
    %485 = vector.broadcast %cst_110 : f32 to vector<2x32xf32>
    %486 = arith.select %482, %477, %485 : vector<2x32xi1>, vector<2x32xf32>
    %c12_111 = arith.constant 12 : index
    %c0_112 = arith.constant 0 : index
    %487 = vector.load %arg9[%c12_111, %c0_112] : memref<16x64xf32, #tpu.memory_space<vmem>>, vector<2x32xf32>
    tpu.vector_store %arg9[%c12_111, %c0_112], %486 {strides = array<i32>} : memref<16x64xf32, #tpu.memory_space<vmem>>, vector<2x32xf32>,
    %cst_113 = arith.constant 0.000000e+00 : f32
    %488 = vector.broadcast %cst_113 : f32 to vector<2x32xf32>
    %489 = arith.select %484, %480, %488 : vector<2x32xi1>, vector<2x32xf32>
    %c2_114 = arith.constant 2 : index
    %c32_115 = arith.constant 32 : index
    %490 = vector.load %arg9[%c2_114, %c32_115] : memref<16x64xf32, #tpu.memory_space<vmem>>, vector<2x32xf32>
    tpu.vector_store %arg9[%c2_114, %c32_115], %489 {strides = array<i32>} : memref<16x64xf32, #tpu.memory_space<vmem>>, vector<2x32xf32>,
    %491 = arith.select %482, %477, %473 : vector<2x32xi1>, vector<2x32xf32>
    %492 = arith.select %484, %480, %474 : vector<2x32xi1>, vector<2x32xf32>
    %493 = tpu.concatenate %491, %492 in 1 : vector<2x32xf32>, vector<2x32xf32> -> vector<2x64xf32>
    %c14_116 = arith.constant 14 : index
    %c0_117 = arith.constant 0 : index
    %494 = vector.load %arg8[%c14_116, %c0_117] : memref<16x256xf32, #tpu.memory_space<vmem>>, vector<2x96xf32>
    %c0_118 = arith.constant 0 : index
    %c128_119 = arith.constant 128 : index
    %495 = vector.load %arg8[%c0_118, %c128_119] : memref<16x256xf32, #tpu.memory_space<vmem>>, vector<2x96xf32>
    %cst_120 = arith.constant dense<0.000000e+00> : vector<2x256xf32>
    %496 = tpu.matmul %493, %7, %cst_120 {dimension_numbers = #tpu.dot_dimension_numbers<[1], [0], [0], [1], [0, 0, 1, 1], [], []>} : vector<2x64xf32>, vector<64x256xf32>, vector<2x256xf32> -> vector<2x256xf32>
    %497 = vector.extract_strided_slice %494 {offsets = [0, 0], sizes = [2, 32], strides = [1, 1]} : vector<2x96xf32> to vector<2x32xf32>
    %498 = vector.extract_strided_slice %496 {offsets = [0, 0], sizes = [2, 32], strides = [1, 1]} : vector<2x256xf32> to vector<2x32xf32>
    %499 = arith.addf %497, %498 : vector<2x32xf32>
    %500 = arith.negf %499 : vector<2x32xf32>
    %501 = math.exp %500 : vector<2x32xf32>
    %cst_121 = arith.constant 1.000000e+00 : f32
    %502 = vector.broadcast %cst_121 : f32 to vector<2x32xf32>
    %503 = arith.addf %502, %501 : vector<2x32xf32>
    %504 = arith.divf %502, %503 : vector<2x32xf32>
    %505 = vector.extract_strided_slice %494 {offsets = [0, 32], sizes = [2, 32], strides = [1, 1]} : vector<2x96xf32> to vector<2x32xf32>
    %506 = vector.extract_strided_slice %496 {offsets = [0, 32], sizes = [2, 32], strides = [1, 1]} : vector<2x256xf32> to vector<2x32xf32>
    %507 = arith.addf %505, %506 : vector<2x32xf32>
    %508 = arith.negf %507 : vector<2x32xf32>
    %509 = math.exp %508 : vector<2x32xf32>
    %cst_122 = arith.constant 1.000000e+00 : f32
    %510 = vector.broadcast %cst_122 : f32 to vector<2x32xf32>
    %511 = arith.addf %510, %509 : vector<2x32xf32>
    %512 = arith.divf %510, %511 : vector<2x32xf32>
    %513 = vector.extract_strided_slice %494 {offsets = [0, 64], sizes = [2, 32], strides = [1, 1]} : vector<2x96xf32> to vector<2x32xf32>
    %514 = vector.extract_strided_slice %496 {offsets = [0, 64], sizes = [2, 32], strides = [1, 1]} : vector<2x256xf32> to vector<2x32xf32>
    %515 = arith.addf %514, %10 : vector<2x32xf32>
    %516 = arith.mulf %504, %515 : vector<2x32xf32>
    %517 = arith.addf %513, %516 : vector<2x32xf32>
    %518 = math.tanh %517 : vector<2x32xf32>
    %519 = vector.extract_strided_slice %495 {offsets = [0, 0], sizes = [2, 32], strides = [1, 1]} : vector<2x96xf32> to vector<2x32xf32>
    %520 = vector.extract_strided_slice %496 {offsets = [0, 128], sizes = [2, 32], strides = [1, 1]} : vector<2x256xf32> to vector<2x32xf32>
    %521 = arith.addf %519, %520 : vector<2x32xf32>
    %522 = arith.negf %521 : vector<2x32xf32>
    %523 = math.exp %522 : vector<2x32xf32>
    %cst_123 = arith.constant 1.000000e+00 : f32
    %524 = vector.broadcast %cst_123 : f32 to vector<2x32xf32>
    %525 = arith.addf %524, %523 : vector<2x32xf32>
    %526 = arith.divf %524, %525 : vector<2x32xf32>
    %527 = vector.extract_strided_slice %495 {offsets = [0, 32], sizes = [2, 32], strides = [1, 1]} : vector<2x96xf32> to vector<2x32xf32>
    %528 = vector.extract_strided_slice %496 {offsets = [0, 160], sizes = [2, 32], strides = [1, 1]} : vector<2x256xf32> to vector<2x32xf32>
    %529 = arith.addf %527, %528 : vector<2x32xf32>
    %530 = arith.negf %529 : vector<2x32xf32>
    %531 = math.exp %530 : vector<2x32xf32>
    %cst_124 = arith.constant 1.000000e+00 : f32
    %532 = vector.broadcast %cst_124 : f32 to vector<2x32xf32>
    %533 = arith.addf %532, %531 : vector<2x32xf32>
    %534 = arith.divf %532, %533 : vector<2x32xf32>
    %535 = vector.extract_strided_slice %495 {offsets = [0, 64], sizes = [2, 32], strides = [1, 1]} : vector<2x96xf32> to vector<2x32xf32>
    %536 = vector.extract_strided_slice %496 {offsets = [0, 192], sizes = [2, 32], strides = [1, 1]} : vector<2x256xf32> to vector<2x32xf32>
    %537 = arith.addf %536, %13 : vector<2x32xf32>
    %538 = arith.mulf %526, %537 : vector<2x32xf32>
    %539 = arith.addf %535, %538 : vector<2x32xf32>
    %540 = math.tanh %539 : vector<2x32xf32>
    %541 = vector.extract_strided_slice %493 {offsets = [0, 0], sizes = [2, 32], strides = [1, 1]} : vector<2x64xf32> to vector<2x32xf32>
    %542 = vector.extract_strided_slice %493 {offsets = [0, 32], sizes = [2, 32], strides = [1, 1]} : vector<2x64xf32> to vector<2x32xf32>
    %543 = arith.subf %541, %518 : vector<2x32xf32>
    %544 = arith.mulf %512, %543 : vector<2x32xf32>
    %545 = arith.addf %518, %544 : vector<2x32xf32>
    %546 = arith.subf %542, %540 : vector<2x32xf32>
    %547 = arith.mulf %534, %546 : vector<2x32xf32>
    %548 = arith.addf %540, %547 : vector<2x32xf32>
    %c7_i32_125 = arith.constant 7 : i32
    %549 = vector.broadcast %c7_i32_125 : i32 to vector<2x32xi32>
    %550 = arith.cmpi sgt, %16, %549 : vector<2x32xi32>
    %c0_i32_126 = arith.constant 0 : i32
    %551 = vector.broadcast %c0_i32_126 : i32 to vector<2x32xi32>
    %552 = arith.cmpi sgt, %16, %551 : vector<2x32xi32>
    %cst_127 = arith.constant 0.000000e+00 : f32
    %553 = vector.broadcast %cst_127 : f32 to vector<2x32xf32>
    %554 = arith.select %550, %545, %553 : vector<2x32xi1>, vector<2x32xf32>
    %c14_128 = arith.constant 14 : index
    %c0_129 = arith.constant 0 : index
    %555 = vector.load %arg9[%c14_128, %c0_129] : memref<16x64xf32, #tpu.memory_space<vmem>>, vector<2x32xf32>
    tpu.vector_store %arg9[%c14_128, %c0_129], %554 {strides = array<i32>} : memref<16x64xf32, #tpu.memory_space<vmem>>, vector<2x32xf32>,
    %cst_130 = arith.constant 0.000000e+00 : f32
    %556 = vector.broadcast %cst_130 : f32 to vector<2x32xf32>
    %557 = arith.select %552, %548, %556 : vector<2x32xi1>, vector<2x32xf32>
    %c0_131 = arith.constant 0 : index
    %c32_132 = arith.constant 32 : index
    %558 = vector.load %arg9[%c0_131, %c32_132] : memref<16x64xf32, #tpu.memory_space<vmem>>, vector<2x32xf32>
    tpu.vector_store %arg9[%c0_131, %c32_132], %557 {strides = array<i32>} : memref<16x64xf32, #tpu.memory_space<vmem>>, vector<2x32xf32>,
    %559 = arith.select %550, %545, %541 : vector<2x32xi1>, vector<2x32xf32>
    %560 = arith.select %552, %548, %542 : vector<2x32xi1>, vector<2x32xf32>
    %561 = tpu.concatenate %559, %560 in 1 : vector<2x32xf32>, vector<2x32xf32> -> vector<2x64xf32>
    %c0_133 = arith.constant 0 : index
    %c0_134 = arith.constant 0 : index
    %562 = vector.load %arg5[%c0_133, %c0_134] : memref<64x96xf32, #tpu.memory_space<vmem>>, vector<64x96xf32>
    %c0_135 = arith.constant 0 : index
    %c0_136 = arith.constant 0 : index
    %563 = vector.load %arg9[%c0_135, %c0_136] : memref<16x64xf32, #tpu.memory_space<vmem>>, vector<16x64xf32>
    %564 = vector.extract_strided_slice %562 {offsets = [0, 0], sizes = [64, 64], strides = [1, 1]} : vector<64x96xf32> to vector<64x64xf32>
    %cst_137 = arith.constant dense<0.000000e+00> : vector<16x64xf32>
    %565 = tpu.matmul %563, %564, %cst_137 {dimension_numbers = #tpu.dot_dimension_numbers<[1], [0], [0], [1], [0, 0, 1, 1], [], []>} : vector<16x64xf32>, vector<64x64xf32>, vector<16x64xf32> -> vector<16x64xf32>
    %c0_138 = arith.constant 0 : index
    %c0_139 = arith.constant 0 : index
    %566 = vector.load %arg6[%c0_138, %c0_139] : memref<16x64xf32, #tpu.memory_space<vmem>>, vector<16x64xf32>
    tpu.vector_store %arg6[%c0_138, %c0_139], %565 {strides = array<i32>} : memref<16x64xf32, #tpu.memory_space<vmem>>, vector<16x64xf32>,
    %567 = vector.extract_strided_slice %562 {offsets = [0, 64], sizes = [64, 32], strides = [1, 1]} : vector<64x96xf32> to vector<64x32xf32>
    %cst_140 = arith.constant dense<0.000000e+00> : vector<2x32xf32>
    %568 = tpu.matmul %561, %567, %cst_140 {dimension_numbers = #tpu.dot_dimension_numbers<[1], [0], [0], [1], [0, 0, 1, 1], [], []>} : vector<2x64xf32>, vector<64x32xf32>, vector<2x32xf32> -> vector<2x32xf32>
    %c0_141 = arith.constant 0 : index
    %c0_142 = arith.constant 0 : index
    %569 = vector.load %arg7[%c0_141, %c0_142] : memref<2x32xf32, #tpu.memory_space<vmem>>, vector<2x32xf32>
    tpu.vector_store %arg7[%c0_141, %c0_142], %568 {strides = array<i32>} : memref<2x32xf32, #tpu.memory_space<vmem>>, vector<2x32xf32>,
    return
  }
}

</mosaic_0001>

<bundles_post_ra>
// kernel: tpu_custom_call.1
= control target key start
LH: loop header
LB: loop body
LE: loop exit
PB: predicated region body
PF: predicated region fallthrough
CT: control target
= control target key end

     0   :  { %13 = vsyncpa [#allocation5], 0  ;;  %s2632_s0 = inlined_call_operand.hbm [shape: f32[16,16], index: 0, kind: input, shape index: {}]   ;;  %s2633_s1 = inlined_call_operand.vmem [shape: s32[2,1], index: 1, kind: input, shape index: {}]   ;;  %s2634_s2 = inlined_call_operand.hbm [shape: f32[16,256], index: 2, kind: input, shape index: {}]   ;;  %s2635_s3 = inlined_call_operand.vmem [shape: f32[1,256], index: 3, kind: input, shape index: {}]   ;;  %s2636_s4 = inlined_call_operand.hbm [shape: f32[64,256], index: 4, kind: input, shape index: {}]   ;;  %s2637_s5 = inlined_call_operand.hbm [shape: f32[64,96], index: 5, kind: input, shape index: {}]   ;;  %s2638_s6 = inlined_call_operand.hbm [shape: f32[16,64], index: 6, kind: output, shape index: {0}]   ;;  %s2639_s7 = inlined_call_operand.hbm [shape: f32[2,32], index: 7, kind: output, shape index: {1}]  }
   0x1   :  { %14 = vsyncpa [#allocation8], 0 }
   0x2   :  { %15 = vsyncpa [#allocation11], 0 }
   0x3   :  { %16 = vsyncpa [#allocation6], 0  ;;  %s37_s26 = sshll.u32 %s2634_s2, 4  ;;  %s38_s26 = int_to_ptr.hbm [resolvable:$true] %s37_s26 }
   0x4   :  { %17 = vsyncpa [#allocation14], 0  ;;  %s2029_s27 = smov [#allocation7]   ;;  %s22_s8 = sshll.u32 %s2632_s0, 4  ;;  %s23_s8 = int_to_ptr.hbm [resolvable:$true] %s22_s8 }
   0x5   :  { %s39_s28 = sshll.u32 %s2029_s27, 4  ;;  %s2030_s9 = smov 256   ;;  %s40_s28 = int_to_ptr.vmem [resolvable:$true] %s39_s28 }
   0x6   :  { %s2031_s10 = smov 16   ;;  %s2032_s11 = smov [#allocation4]  }
   0x7   :  { %45 = dma.hbm_to_vmem [thread:$0]  %s38_s26, 512, %s40_s28, [#allocation8], %s2030_s9, %s2030_s9, %s2031_s10  }
   0x8   :  { %s24_s12 = sshll.u32 %s2032_s11, 4  ;;  %s2033_s13 = smov 128   ;;  %s25_s12 = int_to_ptr.vmem [resolvable:$true] %s24_s12 }
   0x9   :  { %s2034_s14 = smov 8   ;;  %s52_s16 = sshll.u32 %s2636_s4, 4  ;;  %s53_s16 = int_to_ptr.hbm [resolvable:$true] %s52_s16 }
   0xa   :  { %30 = dma.hbm_to_vmem [thread:$0]  %s23_s8, 256, %s25_s12, [#allocation5], %s2033_s13, %s2033_s13, %s2034_s14  }
   0xb   :  { %s2035_s17 = smov [#allocation9]   ;;  %s65_s20 = sshll.u32 %s2637_s5, 4  ;;  %s66_s20 = int_to_ptr.hbm [resolvable:$true] %s65_s20 }
   0xc   :  { %s54_s0 = sshll.u32 %s2035_s17, 4  ;;  %s2036_s21 = smov [#allocation10]   ;;  %s55_s0 = int_to_ptr.vmem [resolvable:$true] %s54_s0 }
   0xd   :  { %60 = dma.hbm_to_vmem [thread:$0]  %s53_s16, 2048, %s55_s0, [#allocation8], %s2030_s9, %s2030_s9, %s2031_s10  }
   0xe   :  { %s67_s22 = sshll.u32 %s2036_s21, 4  ;;  %s68_s22 = int_to_ptr.vmem [resolvable:$true] %s67_s22 }
   0xf   :  { %73 = dma.hbm_to_vmem [thread:$0]  %s66_s20, 1024, %s68_s22, [#allocation11], %s2033_s13, %s2033_s13, %s2034_s14  }
  0x10   :  { %2019 = dma.done.wait [#allocation5], 256  }
  0x11   :  { %2020 = vsyncadd [#allocation5], 4294967040 }
  0x12   :  { %2021 = dma.done.wait [#allocation8], 2560  }
  0x13   :  { %2022 = vsyncadd [#allocation8], 4294964736 }
  0x14   :  { %2023 = dma.done.wait [#allocation11], 1024  }
  0x15   :  { %2024 = vsyncadd [#allocation11], 4294966272  ;;  %v2102_v0 = vld [vmem:[#allocation9 + $0x78] sm:$0xff]  ;;  %v2104_v2 = vld [vmem:[#allocation9 + $0x68] sm:$0xff]  ;;  %vm102_vm0 = vcmask 130048   ;;  %s2037_s23 = smov 96  }
  0x16   :  { %v95_v1 = vld [vmem:[#allocation7 + $0x18] sm:$0xff]  ;;  %219 = vmatpush.msra.mxu3 %v2102_v0  ;;  %v93_v3 = vld [vmem:[#allocation7 + $0x8] sm:$0xff]  ;;  %v90_v4 = vld [vmem:[#allocation4] sm:$0xff]  ;;  %v2038_v22 = vmov 0.0   ;;  %s2041_s30 = smov 32   ;;  %vm2642_vm11 = vcmask 254976  }
  0x17   :  { %146 = vmatpush.msra.mxu1 %v95_v1  ;;  %v2107_v5 = vld [vmem:[#allocation9 + $0x58] sm:$0xff]  ;;  %v94_v6 = vld [vmem:[#allocation7 + $0x10] sm:$0xff]  ;;  %v2111_v7 = vld [vmem:[#allocation9 + $0x48] sm:$0xff]  ;;  %vm2643_vm12 = vcmask 517376   ;;  %vm348_vm13 = vcmask 261120   ;;  %vm187_vm14 = vcmask 523264  }
  0x18   :  { %220 = vmatpush.msra.mxu3 %v2104_v2  ;;  %123 = vmatpush.msra.mxu0 %v94_v6  ;;  %v92_v8 = vld [vmem:[#allocation7] sm:$0xff]  ;;  %v2114_v9 = vld [vmem:[#allocation9 + $0x70] sm:$0xff]  ;;  %v2117_v10 = vld [vmem:[#allocation9 + $0x38] sm:$0xff]  ;;  %s1672_s11 = sshll.u32 %s2638_s6, 4  ;;  %s2043_s12 = smov [#allocation13]   ;;  %s1673_s11 = int_to_ptr.hbm [resolvable:$true] %s1672_s11 }
  0x19   :  { %147 = vmatpush.msra.mxu1 %v93_v3  ;;  %542 = vmatpush.msra.mxu2 %v2114_v9  ;;  %v2122_v11 = vld [vmem:[#allocation9 + $0x60] sm:$0xff]  ;;  %v2127_v13 = vld [vmem:[#allocation9 + $0x28] sm:$0xff]  ;;  %v91_v14 = vld [vmem:[#allocation4 + $0x8] sm:$0xff]  ;;  %s1684_s2 = sshll.u32 %s2043_s12, 4  ;;  %s1686_s17 = sshll.u32 %s2639_s7, 4  ;;  %s1685_s2 = int_to_ptr.vmem [resolvable:$true] %s1684_s2  ;;  %s1687_s17 = int_to_ptr.hbm [resolvable:$true] %s1686_s17 }
  0x1a   :  { %1705 = vmatmul.msk.f32.vlgmr.msra.gmra.mxu1 %vm102_vm0, %v90_v4  ;;  %221 = vmatpush.msra.mxu3 %v2107_v5  ;;  %v1777_v12 = vld [vmem:[%s2635_s3 + $0x1] ss:$0 sm:$0xff]  ;;  %v2132_v15 = vld [vmem:[#allocation9 + $0x50] sm:$0xff]  ;;  %v2135_v16 = vld [vmem:[#allocation9 + $0x18] sm:$0xff] }
  0x1b   :  { %383 = vmatpush.msrb.mxu1 %v2102_v0  ;;  %124 = vmatpush.msra.mxu0 %v92_v8  ;;  %v2140_v17 = vld [vmem:[#allocation9 + $0x40] sm:$0xff]  ;;  %v2144_v18 = vld [vmem:[#allocation9 + $0x8] sm:$0xff]  ;;  %v2148_v19 = vld [vmem:[#allocation9 + $0x30] sm:$0xff] }
  0x1c   :  { %222 = vmatpush.msra.mxu3 %v2111_v7  ;;  %1703 = vmatmul.msk.f32.vlgmr.msra.gmra.mxu0 %vm102_vm0, %v90_v4  ;;  %v1778_v20 = vld [vmem:[%s2635_s3] ss:$0 sm:$0xff]  ;;  %v2161_v23 = vld [vmem:[#allocation9 + $0x10] sm:$0xff] }
  0x1d   :  { %199 = vmatpush.msrb.mxu0 %v2114_v9  ;;  %384 = vmatpush.msrb.mxu1 %v2104_v2  ;;  %v2158_v21 = vld [vmem:[#allocation9 + $0x20] sm:$0xff] }
  0x1e   :  { %223 = vmatpush.msra.mxu3 %v2117_v10  ;;  %289 = vrot.lane.b32.xlu0 %v1777_v12, %s2037_s23  ;;  %v2167_v24 = vld [vmem:[#allocation9] sm:$0xff] }
  0x1f   :  { %200 = vmatpush.msrb.mxu0 %v2122_v11  ;;  %385 = vmatpush.msrb.mxu1 %v2107_v5  ;;  %v96_v25 = vld [vmem:[%s2635_s3] sm:$0x3]  ;;  %s2039_s3 = smov 64  }
  0x20   :  { %224 = vmatpush.msra.mxu3 %v2127_v13  ;;  %543 = vmatpush.msra.mxu2 %v2122_v11  ;;  %v99_v26 = vperm.slane %v96_v25, 1  ;;  %v98_v28 = vperm.slane %v96_v25, 0 }
  0x21   :  { %201 = vmatpush.msrb.mxu0 %v2132_v15  ;;  %386 = vmatpush.msrb.mxu1 %v2111_v7 }
  0x22   :  { %1706 = vmatmul.msk.f32.gmra.mxu1 %vm102_vm0, %v91_v14  ;;  %225 = vmatpush.msra.mxu3 %v2135_v16 }
  0x23   :  { %202 = vmatpush.msrb.mxu0 %v2140_v17  ;;  %544 = vmatpush.msra.mxu2 %v2132_v15 }
  0x24   :  { %226 = vmatpush.msra.mxu3 %v2144_v18  ;;  %1704 = vmatmul.msk.f32.gmra.mxu0 %vm102_vm0, %v91_v14 }
  0x25   :  { %227 = vmatmul.f32.vlgmr.msra.gmra.mxu3 %v2038_v22  ;;  %203 = vmatpush.msrb.mxu0 %v2148_v19 }
  0x26   :  { %251 = vrot.lane.b32.xlu0 %v1778_v20, %s2037_s23  ;;  %387 = vmatpush.msrb.mxu1 %v2117_v10 }
  0x27   :  { %204 = vmatpush.msrb.mxu0 %v2158_v21  ;;  %562 = vmatpush.msrb.mxu3 %v2102_v0 }
  0x28   :  { %388 = vmatpush.msrb.mxu1 %v2127_v13  ;;  %545 = vmatpush.msra.mxu2 %v2140_v17 }
  0x29   :  { %205 = vmatpush.msrb.mxu0 %v2161_v23  ;;  %563 = vmatpush.msrb.mxu3 %v2104_v2 }
  0x2a   :  { %389 = vmatpush.msrb.mxu1 %v2135_v16  ;;  %546 = vmatpush.msra.mxu2 %v2148_v19 }
  0x2b   :  { %206 = vmatpush.msrb.mxu0 %v2167_v24  ;;  %564 = vmatpush.msrb.mxu3 %v2107_v5 }
  0x2c   :  { %207 = vmatmul.f32.vlgmr.msrb.gmra.mxu0 %v2038_v22  ;;  %390 = vmatpush.msrb.mxu1 %v2144_v18 }
  0x2d   :  { %363 = vmatpush.msra.mxu0 %v2114_v9  ;;  %565 = vmatpush.msrb.mxu3 %v2111_v7 }
  0x2e   :  { %547 = vmatpush.msra.mxu2 %v2158_v21  ;;  %741 = vmatpush.msra.mxu1 %v2102_v0 }
  0x2f   :  { %364 = vmatpush.msra.mxu0 %v2122_v11  ;;  %566 = vmatpush.msrb.mxu3 %v2117_v10 }
  0x30   :  { %548 = vmatpush.msra.mxu2 %v2161_v23  ;;  %742 = vmatpush.msra.mxu1 %v2104_v2 }
  0x31   :  { %365 = vmatpush.msra.mxu0 %v2132_v15  ;;  %567 = vmatpush.msrb.mxu3 %v2127_v13 }
  0x32   :  { %549 = vmatpush.msra.mxu2 %v2167_v24  ;;  %743 = vmatpush.msra.mxu1 %v2107_v5 }
  0x33   :  { %366 = vmatpush.msra.mxu0 %v2140_v17  ;;  %568 = vmatpush.msrb.mxu3 %v2135_v16 }
  0x34   :  { %744 = vmatpush.msra.mxu1 %v2111_v7  ;;  %887 = vmatpush.msrb.mxu2 %v2114_v9 }
  0x35   :  { %367 = vmatpush.msra.mxu0 %v2148_v19  ;;  %569 = vmatpush.msrb.mxu3 %v2144_v18 }
  0x36   :  { %745 = vmatpush.msra.mxu1 %v2117_v10  ;;  %888 = vmatpush.msrb.mxu2 %v2122_v11 }
  0x37   :  { %907 = vmatpush.msra.mxu3 %v2102_v0  ;;  %368 = vmatpush.msra.mxu0 %v2158_v21 }
  0x38   :  { %746 = vmatpush.msra.mxu1 %v2127_v13  ;;  %889 = vmatpush.msrb.mxu2 %v2132_v15 }
  0x39   :  { %908 = vmatpush.msra.mxu3 %v2104_v2  ;;  %369 = vmatpush.msra.mxu0 %v2161_v23 }
  0x3a   :  { %747 = vmatpush.msra.mxu1 %v2135_v16  ;;  %890 = vmatpush.msrb.mxu2 %v2140_v17 }
  0x3b   :  { %909 = vmatpush.msra.mxu3 %v2107_v5  ;;  %370 = vmatpush.msra.mxu0 %v2167_v24 }
  0x3c   :  { %748 = vmatpush.msra.mxu1 %v2144_v18  ;;  %891 = vmatpush.msrb.mxu2 %v2148_v19 }
  0x3d   :  { %721 = vmatpush.msrb.mxu0 %v2114_v9  ;;  %910 = vmatpush.msra.mxu3 %v2111_v7 }
  0x3e   :  { %892 = vmatpush.msrb.mxu2 %v2158_v21 }
  0x3f   :  { %722 = vmatpush.msrb.mxu0 %v2122_v11  ;;  %911 = vmatpush.msra.mxu3 %v2117_v10 }
  0x40   :  { %893 = vmatpush.msrb.mxu2 %v2161_v23 }
  0x41   :  { %723 = vmatpush.msrb.mxu0 %v2132_v15  ;;  %912 = vmatpush.msra.mxu3 %v2127_v13 }
  0x42   :  { %894 = vmatpush.msrb.mxu2 %v2167_v24 }
  0x43   :  { %724 = vmatpush.msrb.mxu0 %v2140_v17  ;;  %913 = vmatpush.msra.mxu3 %v2135_v16 }
  0x45   :  { %725 = vmatpush.msrb.mxu0 %v2148_v19  ;;  %914 = vmatpush.msra.mxu3 %v2144_v18 }
  0x47   :  { %726 = vmatpush.msrb.mxu0 %v2158_v21 }
  0x49   :  { %727 = vmatpush.msrb.mxu0 %v2161_v23 }
  0x4b   :  { %728 = vmatpush.msrb.mxu0 %v2167_v24 }
  0x90   :  { %v2229_v36 = vpop.permute.xlu0 %289 }
  0x97   :  { %v149_v27 = vpop.f32.mrf.mxu1 }
  0x98   :  { %v150_v29 = vadd.f32 %v149_v27, %v99_v26  ;;  %v2233_v40 = vpop.permute.xlu0 %251 }
  0x99   :  { %v126_v30 = vpop.f32.mrf.mxu0 }
  0x9a   :  { %156 = vst [vmem:[#allocation2] sm:$0xff] %v150_v29  ;;  %v127_v31 = vadd.f32 %v126_v30, %v98_v28 }
  0x9c   :  { %155 = vst [vmem:[#allocation2 + $0x10] sm:$0xff] %v127_v31 }
  0x9f   :  { %v152_v32 = vpop.f32.mrf.mxu1 }
  0xa0   :  { %v153_v33 = vadd.f32 %v152_v32, %v99_v26 }
  0xa1   :  { %v129_v34 = vpop.f32.mrf.mxu0 }
  0xa2   :  { %158 = vst [vmem:[#allocation2 + $0x8] sm:$0xff] %v153_v33  ;;  %v130_v35 = vadd.f32 %v129_v34, %v98_v28 }
  0xa3   :  { %v185_v47 = vld [vmem:[#allocation2 + $0x10] sm:$0x3] }
  0xa4   :  { %157 = vst [vmem:[#allocation2 + $0x18] sm:$0xff] %v130_v35 }
  0xa8   :  { %v228_v37 = vpop.f32.mrf.mxu3 }
  0xa9   :  { %v292_v38 = vadd.f32 %v2229_v36, %v228_v37  ;;  %v208_v41 = vpop.f32.mrf.mxu0  ;;  %v267_v43 = vrot.slane %v228_v37, 2  ;;  %v186_v44 = vld [vmem:[#allocation2 + $0x8] sm:$0xc0] }
  0xaa   :  { %v254_v42 = vadd.f32 %v2233_v40, %v208_v41  ;;  %v231_v48 = vadd.f32 %v208_v41, %v185_v47  ;;  %v181_v41 = vld [vmem:[%s2633_s1] sm:$0x3]  ;;  %s2042_s1 = smov [#allocation12]  }
  0xab   :  { %v294_v39 = vrot.slane %v292_v38, 2  ;;  %v269_v45 = vadd.f32 %v267_v43, %v186_v44  ;;  %s1670_s8 = sshll.u32 %s2042_s1, 4  ;;  %s1671_s8 = int_to_ptr.vmem [resolvable:$true] %s1670_s8 }
  0xac   :  { %v1707_v49 = vmul.f32 -1.442695, %v231_v48 }
  0xad   :  { %295 = vrot.lane.b32.xlu1 %v294_v39, %s2039_s3  ;;  %v1708_v46 = vmul.f32 -1.442695, %v269_v45  ;;  %v2040_v39 = vmov 0  }
  0xae   :  { %1755 = vset.pattern.permute.xlu1 %v2040_v39  ;;  %1776 = vset.pattern.permute.xlu0 %v2040_v39 }
  0xaf   :  { %1779 = vpow2.f32 %v1708_v46 }
  0xb0   :  { %1781 = vpow2.f32 %v1707_v49 }
  0xb5   :  { %256 = vrot.lane.b32.xlu1 %v254_v42, %s2039_s3  ;;  %v1780_v50 = vpop.eup %1779 }
  0xb6   :  { %v273_v51 = vadd.f32 1.0, %v1780_v50  ;;  %v1782_v52 = vpop.eup %1781 }
  0xb7   :  { %v235_v53 = vadd.f32 1.0, %v1782_v52 }
  0xb8   :  { %1783 = vrcp.f32 %v273_v51  ;;  %v285_v62 = vand.u32 2147483648, %v273_v51  ;;  %vm279_vm2 = vweird.f32 %v273_v51  ;;  %v283_v63 = vand.u32 2147483647, %v273_v51 }
  0xb9   :  { %1785 = vrcp.f32 %v235_v53  ;;  %vm241_vm5 = vweird.f32 %v235_v53  ;;  %v247_v12 = vand.u32 2147483648, %v235_v53  ;;  %v245_v22 = vand.u32 2147483647, %v235_v53 }
  0xba   :  { %v286_v4 = vor.u32 1.1754944e-38, %v285_v62  ;;  %vm284_vm4 = vcmp.eq.f32.partialorder %v283_v63, 8.507059e+37 }
  0xbb   :  { %v248_v25 = vor.u32 1.1754944e-38, %v247_v12  ;;  %vm246_vm8 = vcmp.eq.f32.partialorder %v245_v22, 8.507059e+37 }
  0xbe   :  { %v1784_v54 = vpop.eup %1783 }
  0xbf   :  { %v275_v55 = vmul.f32 %v1784_v54, %v273_v51  ;;  %v1786_v57 = vpop.eup %1785  ;;  %vm280_vm1 = vweird.f32 %v1784_v54 }
  0xc0   :  { %v237_v59 = vmul.f32 %v1786_v57, %v235_v53  ;;  %vm281_vm3 = vmor %vm279_vm2, %vm280_vm1  ;;  %vm242_vm6 = vweird.f32 %v1786_v57 }
  0xc1   :  { %v276_v56 = vsub.f32 1.0, %v275_v55  ;;  %vm243_vm7 = vmor %vm241_vm5, %vm242_vm6 }
  0xc2   :  { %v238_v61 = vsub.f32 1.0, %v237_v59 }
  0xc3   :  { %v277_v58 = vmul.f32 %v1784_v54, %v276_v56 }
  0xc4   :  { %v239_v3 = vmul.f32 %v1786_v57, %v238_v61 }
  0xc5   :  { %v278_v60 = vadd.f32 %v1784_v54, %v277_v58 }
  0xc6   :  { %v240_v20 = vadd.f32 %v1786_v57, %v239_v3  ;;  %v350_v3 = vld [vmem:[#allocation2 + $0x10] sm:$0xc] }
  0xc7   :  { %v282_v1 = vsel %vm281_vm3, %v1784_v54, %v278_v60 }
  0xc8   :  { %v287_v8 = vsel %vm284_vm4, %v286_v4, %v282_v1  ;;  %v244_v26 = vsel %vm243_vm7, %v1786_v57, %v240_v20  ;;  %v351_v20 = vld [vmem:[#allocation2 + $0x8] sm:$0x30] }
  0xc9   :  { %v249_v28 = vsel %vm246_vm8, %v248_v25, %v244_v26 }
 0x11f   :  { %v296_v6 = vpop.permute.xlu1 %295 }
 0x120   :  { %v298_v14 = vmul.f32 %v296_v6, %v287_v8 }
 0x122   :  { %300 = vrot.lane.b32.xlu2 %v298_v14, %s2039_s3 }
 0x127   :  { %v257_v27 = vpop.permute.xlu1 %256 }
 0x128   :  { %v259_v29 = vmul.f32 %v257_v27, %v249_v28 }
 0x12a   :  { %261 = vrot.lane.b32.xlu2 %v259_v29, %s2039_s3 }
 0x17c   :  { %v301_v30 = vpop.permute.xlu2 %300 }
 0x17d   :  { %v303_v31 = vadd.f32 %v301_v30, %v186_v44 }
 0x17f   :  { %1787 = vtanh.f32 %v303_v31 }
 0x184   :  { %v262_v32 = vpop.permute.xlu2 %261 }
 0x185   :  { %v1788_v33 = vpop.eup %1787  ;;  %v264_v34 = vadd.f32 %v262_v32, %v185_v47 }
 0x186   :  { %v316_v35 = vsub.f32 0.0, %v1788_v33 }
 0x187   :  { %1789 = vtanh.f32 %v264_v34 }
 0x188   :  { %318 = vrot.lane.b32.xlu0 %v316_v35, %s2037_s23 }
 0x18d   :  { %v1790_v37 = vpop.eup %1789 }
 0x18e   :  { %v305_v38 = vsub.f32 0.0, %v1790_v37 }
 0x190   :  { %307 = vrot.lane.b32.xlu1 %v305_v38, %s2037_s23 }
 0x198   :  { %183 = vperm.xlu1 %1755, %v181_v41  }
 0x1fa   :  { %v319_v42 = vpop.permute.xlu0 %318 }
 0x1fb   :  { %v321_v43 = vmul.f32 %v319_v42, %v287_v8 }
 0x1fd   :  { %323 = vrot.lane.b32.xlu2 %v321_v43, %s2041_s30 }
 0x202   :  { %v308_v44 = vpop.permute.xlu1 %307 }
 0x203   :  { %v310_v45 = vmul.f32 %v308_v44, %v249_v28 }
 0x205   :  { %312 = vrot.lane.b32.xlu0 %v310_v45, %s2041_s30 }
 0x20a   :  { %v2247_v49 = vpop.permute.xlu1 %183 }
 0x20b   :  { %vm2641_vm9 = vcmp.gt.s32.totalorder %v2247_v49, 0  ;;  %vm2640_vm10 = vcmp.gt.s32.totalorder %v2247_v49, 7  ;;  %vm500_vm7 = vcmp.gt.s32.totalorder %v2247_v49, 6  ;;  %vm499_vm8 = vcmp.gt.s32.totalorder %v2247_v49, 1 }
 0x257   :  { %v324_v46 = vpop.permute.xlu2 %323 }
 0x258   :  { %v326_v47 = vadd.f32 %v1788_v33, %v324_v46 }
 0x25a   :  { %v337_v48 = vrot.slane %v326_v47, 6 }
 0x25c   :  { %338 = vrot.lane.b32.xlu2 %v337_v48, %s2039_s3 }
 0x277   :  { %v313_v50 = vpop.permute.xlu0 %312 }
 0x278   :  { %v315_v51 = vadd.f32 %v1790_v37, %v313_v50 }
 0x27a   :  { %v329_v52 = vsel %vm2641_vm9, %v315_v51, 0.0 }
 0x27b   :  { %331 = vrot.lane.b32.xlu0 %v329_v52, %s2039_s3 }
 0x2b6   :  { %v339_v53 = vpop.permute.xlu2 %338 }
 0x2b7   :  { %v341_v54 = vsel %vm2640_vm10, %v339_v53, 0.0 }
 0x2b8   :  { %343 = vrot.lane.b32.xlu1 %v341_v54, %s2041_s30 }
 0x2ed   :  { %v332_v55 = vpop.permute.xlu0 %331 }
 0x2ee   :  { %335 = vst.msk [vmem:[#allocation3] sm:$0x3] %vm2642_vm11, %v332_v55 }
 0x32a   :  { %v344_v56 = vpop.permute.xlu1 %343 }
 0x32b   :  { %347 = vst.msk [vmem:[#allocation3 + $0xe] sm:$0x3] %vm2643_vm12, %v344_v56  ;;  %v2260_v57 = vsel %vm348_vm13, %v332_v55, %v344_v56 }
 0x32c   :  { %1709 = vmatmul.msk.f32.vlgmr.msra.gmra.mxu0 %vm187_vm14, %v2260_v57  ;;  %1710 = vmatmul.msk.f32.vlgmr.msrb.gmra.mxu1 %vm187_vm14, %v2260_v57 }
 0x32d   :  { %1064 = vmatpush.msra.mxu0 %v2114_v9  ;;  %1084 = vmatpush.msrb.mxu1 %v2102_v0 }
 0x32f   :  { %1065 = vmatpush.msra.mxu0 %v2122_v11  ;;  %1085 = vmatpush.msrb.mxu1 %v2104_v2 }
 0x331   :  { %1066 = vmatpush.msra.mxu0 %v2132_v15  ;;  %1086 = vmatpush.msrb.mxu1 %v2107_v5 }
 0x333   :  { %1067 = vmatpush.msra.mxu0 %v2140_v17  ;;  %1087 = vmatpush.msrb.mxu1 %v2111_v7 }
 0x335   :  { %1068 = vmatpush.msra.mxu0 %v2148_v19  ;;  %1088 = vmatpush.msrb.mxu1 %v2117_v10 }
 0x337   :  { %1069 = vmatpush.msra.mxu0 %v2158_v21  ;;  %1089 = vmatpush.msrb.mxu1 %v2127_v13 }
 0x339   :  { %1070 = vmatpush.msra.mxu0 %v2161_v23  ;;  %1090 = vmatpush.msrb.mxu1 %v2135_v16 }
 0x33b   :  { %1071 = vmatpush.msra.mxu0 %v2167_v24  ;;  %1091 = vmatpush.msrb.mxu1 %v2144_v18 }
 0x3a9   :  { %v372_v58 = vpop.f32.mrf.mxu0  ;;  %v392_v59 = vpop.f32.mrf.mxu1 }
 0x3aa   :  { %v418_v60 = vadd.f32 %v372_v58, %v2233_v40  ;;  %v454_v61 = vadd.f32 %v392_v59, %v2229_v36  ;;  %v396_v1 = vrot.slane %v372_v58, 6  ;;  %v432_v14 = vrot.slane %v392_v59, 4 }
 0x3ac   :  { %v420_v62 = vrot.slane %v418_v60, 6  ;;  %v456_v63 = vrot.slane %v454_v61, 4  ;;  %v398_v4 = vadd.f32 %v396_v1, %v350_v3  ;;  %v434_v22 = vadd.f32 %v432_v14, %v351_v20 }
 0x3ae   :  { %457 = vrot.lane.b32.xlu0 %v456_v63, %s2039_s3  ;;  %421 = vrot.lane.b32.xlu2 %v420_v62, %s2039_s3  ;;  %v1711_v6 = vmul.f32 -1.442695, %v398_v4  ;;  %v1712_v26 = vmul.f32 -1.442695, %v434_v22 }
 0x3b0   :  { %1791 = vpow2.f32 %v1711_v6 }
 0x3b6   :  { %v1792_v8 = vpop.eup %1791 }
 0x3b7   :  { %v402_v12 = vadd.f32 1.0, %v1792_v8 }
 0x3b9   :  { %1793 = vrcp.f32 %v402_v12  ;;  %v414_v33 = vand.u32 2147483648, %v402_v12  ;;  %vm408_vm0 = vweird.f32 %v402_v12  ;;  %v412_v34 = vand.u32 2147483647, %v402_v12 }
 0x3ba   :  { %1795 = vpow2.f32 %v1712_v26 }
 0x3bb   :  { %v415_v37 = vor.u32 1.1754944e-38, %v414_v33  ;;  %vm413_vm2 = vcmp.eq.f32.partialorder %v412_v34, 8.507059e+37 }
 0x3bf   :  { %v1794_v25 = vpop.eup %1793 }
 0x3c0   :  { %v404_v27 = vmul.f32 %v1794_v25, %v402_v12  ;;  %v1796_v29 = vpop.eup %1795  ;;  %vm409_vm15 = vweird.f32 %v1794_v25 }
 0x3c1   :  { %v438_v31 = vadd.f32 1.0, %v1796_v29  ;;  %vm410_vm1 = vmor %vm408_vm0, %vm409_vm15 }
 0x3c2   :  { %v405_v28 = vsub.f32 1.0, %v404_v27 }
 0x3c3   :  { %1797 = vrcp.f32 %v438_v31  ;;  %v450_v47 = vand.u32 2147483648, %v438_v31  ;;  %vm444_vm4 = vweird.f32 %v438_v31  ;;  %v448_v48 = vand.u32 2147483647, %v438_v31 }
 0x3c4   :  { %v406_v30 = vmul.f32 %v1794_v25, %v405_v28 }
 0x3c5   :  { %v451_v51 = vor.u32 1.1754944e-38, %v450_v47  ;;  %vm449_vm6 = vcmp.eq.f32.partialorder %v448_v48, 8.507059e+37  ;;  %v529_v48 = vld [vmem:[#allocation2 + $0x10] sm:$0x30] }
 0x3c6   :  { %v407_v32 = vadd.f32 %v1794_v25, %v406_v30 }
 0x3c8   :  { %v411_v35 = vsel %vm410_vm1, %v1794_v25, %v407_v32 }
 0x3c9   :  { %v416_v39 = vsel %vm413_vm2, %v415_v37, %v411_v35  ;;  %v1798_v42 = vpop.eup %1797 }
 0x3ca   :  { %v440_v43 = vmul.f32 %v1798_v42, %v438_v31  ;;  %vm445_vm3 = vweird.f32 %v1798_v42 }
 0x3cb   :  { %vm446_vm5 = vmor %vm444_vm4, %vm445_vm3 }
 0x3cc   :  { %v441_v44 = vsub.f32 1.0, %v440_v43 }
 0x3ce   :  { %v442_v45 = vmul.f32 %v1798_v42, %v441_v44 }
 0x3d0   :  { %v443_v46 = vadd.f32 %v1798_v42, %v442_v45 }
 0x3d2   :  { %v447_v50 = vsel %vm446_vm5, %v1798_v42, %v443_v46 }
 0x3d3   :  { %v452_v53 = vsel %vm449_vm6, %v451_v51, %v447_v50  ;;  %v530_v51 = vld [vmem:[#allocation2 + $0x8] sm:$0xc] }
 0x408   :  { %v422_v38 = vpop.permute.xlu2 %421 }
 0x409   :  { %v424_v41 = vmul.f32 %v422_v38, %v416_v39 }
 0x40b   :  { %426 = vrot.lane.b32.xlu1 %v424_v41, %s2039_s3 }
 0x420   :  { %v458_v52 = vpop.permute.xlu0 %457 }
 0x421   :  { %v460_v54 = vmul.f32 %v458_v52, %v452_v53 }
 0x423   :  { %462 = vrot.lane.b32.xlu2 %v460_v54, %s2039_s3 }
 0x47d   :  { %v463_v55 = vpop.permute.xlu2 %462  ;;  %v427_v56 = vpop.permute.xlu1 %426 }
 0x47e   :  { %v465_v58 = vadd.f32 %v463_v55, %v351_v20  ;;  %v429_v59 = vadd.f32 %v427_v56, %v350_v3 }
 0x480   :  { %1799 = vtanh.f32 %v465_v58 }
 0x481   :  { %1801 = vtanh.f32 %v429_v59 }
 0x486   :  { %v1800_v60 = vpop.eup %1799 }
 0x487   :  { %v1802_v61 = vpop.eup %1801  ;;  %v485_v62 = vrot.slane %v1800_v60, 4 }
 0x488   :  { %v468_v63 = vrot.slane %v1802_v61, 2 }
 0x489   :  { %486 = vrot.lane.b32.xlu1 %v485_v62, %s2037_s23 }
 0x48a   :  { %469 = vrot.lane.b32.xlu0 %v468_v63, %s2039_s3 }
 0x4fb   :  { %v487_v1 = vpop.permute.xlu1 %486 }
 0x4fc   :  { %v470_v4 = vpop.permute.xlu0 %469  ;;  %v489_v6 = vsub.f32 %v2260_v57, %v487_v1 }
 0x4fd   :  { %v472_v8 = vsub.f32 %v2260_v57, %v470_v4 }
 0x4fe   :  { %v491_v12 = vrot.slane %v489_v6, 4 }
 0x4ff   :  { %v474_v14 = vrot.slane %v472_v8, 6 }
 0x500   :  { %v493_v20 = vmul.f32 %v491_v12, %v452_v53 }
 0x501   :  { %475 = vrot.lane.b32.xlu2 %v474_v14, %s2041_s30 }
 0x502   :  { %495 = vrot.lane.b32.xlu0 %v493_v20, %s2041_s30 }
 0x50a   :  { %520 = vrot.lane.b32.xlu0 %v2260_v57, %s2037_s23 }
 0x55b   :  { %v476_v3 = vpop.permute.xlu2 %475 }
 0x55c   :  { %v478_v22 = vmul.f32 %v476_v3, %v416_v39 }
 0x55e   :  { %480 = vrot.lane.b32.xlu1 %v478_v22, %s2041_s30 }
 0x574   :  { %v496_v25 = vpop.permute.xlu0 %495 }
 0x575   :  { %v498_v26 = vadd.f32 %v1800_v60, %v496_v25 }
 0x577   :  { %v509_v27 = vrot.slane %v498_v26, 4 }
 0x579   :  { %510 = vrot.lane.b32.xlu2 %v509_v27, %s2039_s3 }
 0x57c   :  { %v521_v30 = vpop.permute.xlu0 %520 }
 0x5d0   :  { %v481_v28 = vpop.permute.xlu1 %480 }
 0x5d1   :  { %v483_v29 = vadd.f32 %v1802_v61, %v481_v28 }
 0x5d3   :  { %v502_v31 = vrot.slane %v483_v29, 2  ;;  %v2298_v32 = vpop.permute.xlu2 %510 }
 0x5d4   :  { %v523_v33 = vsel %vm500_vm7, %v2298_v32, %v521_v30 }
 0x5d5   :  { %503 = vrot.lane.b32.xlu1 %v502_v31, %s2039_s3  ;;  %525 = vrot.lane.b32.xlu2 %v523_v33, %s2041_s30 }
 0x62f   :  { %v526_v35 = vpop.permute.xlu2 %525 }
 0x647   :  { %v504_v34 = vpop.permute.xlu1 %503 }
 0x648   :  { %v506_v37 = vsel %vm499_vm8, %v504_v34, 0.0  ;;  %v519_v38 = vsel %vm499_vm8, %v504_v34, %v2260_v57 }
 0x649   :  { %507 = vst.msk [vmem:[#allocation3 + $0x2] sm:$0x3] %vm2642_vm11, %v506_v37  ;;  %v2314_v39 = vsel %vm348_vm13, %v519_v38, %v526_v35 }
 0x64a   :  { %1713 = vmatmul.msk.f32.vlgmr.msra.gmra.mxu2 %vm187_vm14, %v2314_v39  ;;  %1714 = vmatmul.msk.f32.vlgmr.msrb.gmra.mxu3 %vm187_vm14, %v2314_v39 }
 0x64b   :  { %1241 = vmatpush.msra.mxu2 %v2114_v9  ;;  %1261 = vmatpush.msrb.mxu3 %v2102_v0 }
 0x64d   :  { %1242 = vmatpush.msra.mxu2 %v2122_v11  ;;  %1262 = vmatpush.msrb.mxu3 %v2104_v2 }
 0x64f   :  { %1243 = vmatpush.msra.mxu2 %v2132_v15  ;;  %1263 = vmatpush.msrb.mxu3 %v2107_v5 }
 0x651   :  { %1244 = vmatpush.msra.mxu2 %v2140_v17  ;;  %1264 = vmatpush.msrb.mxu3 %v2111_v7 }
 0x653   :  { %1245 = vmatpush.msra.mxu2 %v2148_v19  ;;  %1265 = vmatpush.msrb.mxu3 %v2117_v10 }
 0x655   :  { %1246 = vmatpush.msra.mxu2 %v2158_v21  ;;  %1266 = vmatpush.msrb.mxu3 %v2127_v13 }
 0x657   :  { %1247 = vmatpush.msra.mxu2 %v2161_v23  ;;  %1267 = vmatpush.msrb.mxu3 %v2135_v16 }
 0x659   :  { %1248 = vmatpush.msra.mxu2 %v2167_v24  ;;  %1268 = vmatpush.msrb.mxu3 %v2144_v18 }
 0x6cd   :  { %v551_v57 = vpop.f32.mrf.mxu2  ;;  %v571_v41 = vpop.f32.mrf.mxu3 }
 0x6ce   :  { %v597_v42 = vadd.f32 %v551_v57, %v2233_v40  ;;  %v633_v43 = vadd.f32 %v571_v41, %v2229_v36  ;;  %v575_v46 = vrot.slane %v551_v57, 4  ;;  %v611_v47 = vrot.slane %v571_v41, 6 }
 0x6d0   :  { %v599_v44 = vrot.slane %v597_v42, 4  ;;  %v635_v45 = vrot.slane %v633_v43, 6  ;;  %v577_v50 = vadd.f32 %v575_v46, %v529_v48  ;;  %v613_v52 = vadd.f32 %v611_v47, %v530_v51 }
 0x6d2   :  { %636 = vrot.lane.b32.xlu1 %v635_v45, %s2039_s3  ;;  %600 = vrot.lane.b32.xlu0 %v599_v44, %s2039_s3  ;;  %v1715_v53 = vmul.f32 -1.442695, %v577_v50  ;;  %v1716_v54 = vmul.f32 -1.442695, %v613_v52 }
 0x6d4   :  { %1803 = vpow2.f32 %v1715_v53 }
 0x6d5   :  { %1805 = vpow2.f32 %v1716_v54 }
 0x6da   :  { %v1804_v55 = vpop.eup %1803 }
 0x6db   :  { %v1806_v56 = vpop.eup %1805  ;;  %v581_v58 = vadd.f32 1.0, %v1804_v55 }
 0x6dc   :  { %v617_v59 = vadd.f32 1.0, %v1806_v56 }
 0x6dd   :  { %1807 = vrcp.f32 %v581_v58  ;;  %vm587_vm1 = vweird.f32 %v581_v58  ;;  %v593_v3 = vand.u32 2147483648, %v581_v58  ;;  %v591_v25 = vand.u32 2147483647, %v581_v58 }
 0x6de   :  { %1809 = vrcp.f32 %v617_v59  ;;  %v629_v20 = vand.u32 2147483648, %v617_v59  ;;  %vm623_vm2 = vweird.f32 %v617_v59  ;;  %v627_v22 = vand.u32 2147483647, %v617_v59 }
 0x6df   :  { %v594_v29 = vor.u32 1.1754944e-38, %v593_v3  ;;  %vm592_vm6 = vcmp.eq.f32.partialorder %v591_v25, 8.507059e+37 }
 0x6e0   :  { %v630_v28 = vor.u32 1.1754944e-38, %v629_v20  ;;  %vm628_vm5 = vcmp.eq.f32.partialorder %v627_v22, 8.507059e+37 }
 0x6e3   :  { %v1808_v60 = vpop.eup %1807 }
 0x6e4   :  { %v1810_v61 = vpop.eup %1809  ;;  %v583_v63 = vmul.f32 %v1808_v60, %v581_v58  ;;  %vm588_vm15 = vweird.f32 %v1808_v60 }
 0x6e5   :  { %v619_v62 = vmul.f32 %v1810_v61, %v617_v59  ;;  %vm624_vm0 = vweird.f32 %v1810_v61  ;;  %vm589_vm3 = vmor %vm587_vm1, %vm588_vm15  ;;  %vm679_vm15 = vcmp.gt.s32.totalorder %v2247_v49, 5 }
 0x6e6   :  { %v584_v4 = vsub.f32 1.0, %v583_v63  ;;  %vm625_vm4 = vmor %vm623_vm2, %vm624_vm0  ;;  %vm678_vm0 = vcmp.gt.s32.totalorder %v2247_v49, 2 }
 0x6e7   :  { %v620_v1 = vsub.f32 1.0, %v619_v62 }
 0x6e8   :  { %v585_v8 = vmul.f32 %v1808_v60, %v584_v4 }
 0x6e9   :  { %v621_v6 = vmul.f32 %v1810_v61, %v620_v1 }
 0x6ea   :  { %v586_v14 = vadd.f32 %v1808_v60, %v585_v8 }
 0x6eb   :  { %v622_v12 = vadd.f32 %v1810_v61, %v621_v6 }
 0x6ec   :  { %v590_v27 = vsel %vm589_vm3, %v1808_v60, %v586_v14 }
 0x6ed   :  { %v626_v26 = vsel %vm625_vm4, %v1810_v61, %v622_v12  ;;  %v595_v34 = vsel %vm592_vm6, %v594_v29, %v590_v27 }
 0x6ee   :  { %v631_v31 = vsel %vm628_vm5, %v630_v28, %v626_v26 }
 0x744   :  { %v637_v30 = vpop.permute.xlu1 %636  ;;  %v601_v33 = vpop.permute.xlu0 %600 }
 0x745   :  { %v639_v35 = vmul.f32 %v637_v30, %v631_v31  ;;  %v603_v37 = vmul.f32 %v601_v33, %v595_v34 }
 0x747   :  { %641 = vrot.lane.b32.xlu0 %v639_v35, %s2039_s3  ;;  %605 = vrot.lane.b32.xlu2 %v603_v37, %s2039_s3 }
 0x7a1   :  { %v606_v38 = vpop.permute.xlu2 %605 }
 0x7a2   :  { %v608_v57 = vadd.f32 %v606_v38, %v529_v48 }
 0x7a4   :  { %1811 = vtanh.f32 %v608_v57 }
 0x7aa   :  { %v1812_v41 = vpop.eup %1811 }
 0x7ab   :  { %v647_v42 = vrot.slane %v1812_v41, 4 }
 0x7ad   :  { %648 = vrot.lane.b32.xlu1 %v647_v42, %s2039_s3 }
 0x7b9   :  { %v642_v43 = vpop.permute.xlu0 %641 }
 0x7ba   :  { %v644_v44 = vadd.f32 %v642_v43, %v530_v51 }
 0x7bc   :  { %1813 = vtanh.f32 %v644_v44 }
 0x7c2   :  { %v1814_v45 = vpop.eup %1813 }
 0x7c3   :  { %v664_v46 = vrot.slane %v1814_v45, 2 }
 0x7c5   :  { %665 = vrot.lane.b32.xlu2 %v664_v46, %s2037_s23 }
 0x81f   :  { %v649_v47 = vpop.permute.xlu1 %648  ;;  %v666_v50 = vpop.permute.xlu2 %665 }
 0x820   :  { %v651_v52 = vsub.f32 %v2314_v39, %v649_v47  ;;  %v668_v53 = vsub.f32 %v2314_v39, %v666_v50 }
 0x822   :  { %v653_v54 = vrot.slane %v651_v52, 4  ;;  %v670_v48 = vrot.slane %v668_v53, 6 }
 0x824   :  { %v672_v55 = vmul.f32 %v670_v48, %v631_v31  ;;  %654 = vrot.lane.b32.xlu0 %v653_v54, %s2041_s30 }
 0x826   :  { %674 = vrot.lane.b32.xlu1 %v672_v55, %s2041_s30 }
 0x82e   :  { %699 = vrot.lane.b32.xlu1 %v2314_v39, %s2037_s23 }
 0x896   :  { %v655_v51 = vpop.permute.xlu0 %654 }
 0x897   :  { %v657_v56 = vmul.f32 %v655_v51, %v595_v34 }
 0x898   :  { %v675_v58 = vpop.permute.xlu1 %674 }
 0x899   :  { %v677_v59 = vadd.f32 %v1814_v45, %v675_v58  ;;  %659 = vrot.lane.b32.xlu2 %v657_v56, %s2041_s30 }
 0x89b   :  { %v688_v60 = vrot.slane %v677_v59, 2 }
 0x89d   :  { %689 = vrot.lane.b32.xlu0 %v688_v60, %s2039_s3 }
 0x8a0   :  { %v700_v1 = vpop.permute.xlu1 %699 }
 0x8f3   :  { %v660_v61 = vpop.permute.xlu2 %659 }
 0x8f4   :  { %v662_v62 = vadd.f32 %v1812_v41, %v660_v61 }
 0x8f6   :  { %v681_v63 = vrot.slane %v662_v62, 4 }
 0x8f8   :  { %682 = vrot.lane.b32.xlu2 %v681_v63, %s2039_s3 }
 0x90f   :  { %v2353_v4 = vpop.permute.xlu0 %689 }
 0x910   :  { %v702_v6 = vsel %vm679_vm15, %v2353_v4, %v700_v1 }
 0x911   :  { %704 = vrot.lane.b32.xlu0 %v702_v6, %s2041_s30 }
 0x952   :  { %v683_v8 = vpop.permute.xlu2 %682 }
 0x953   :  { %v685_v12 = vsel %vm678_vm0, %v683_v8, 0.0  ;;  %v698_v14 = vsel %vm678_vm0, %v683_v8, %v2314_v39 }
 0x954   :  { %686 = vst.msk [vmem:[#allocation3 + $0x4] sm:$0x3] %vm2642_vm11, %v685_v12 }
 0x983   :  { %v705_v20 = vpop.permute.xlu0 %704 }
 0x984   :  { %v2368_v3 = vsel %vm348_vm13, %v698_v14, %v705_v20 }
 0x985   :  { %1717 = vmatmul.msk.f32.vlgmr.msrb.gmra.mxu0 %vm187_vm14, %v2368_v3  ;;  %1718 = vmatmul.msk.f32.vlgmr.msra.gmra.mxu1 %vm187_vm14, %v2368_v3 }
 0x986   :  { %1418 = vmatpush.msrb.mxu0 %v2114_v9  ;;  %1438 = vmatpush.msra.mxu1 %v2102_v0 }
 0x988   :  { %1419 = vmatpush.msrb.mxu0 %v2122_v11  ;;  %1439 = vmatpush.msra.mxu1 %v2104_v2  ;;  %v709_v11 = vld [vmem:[#allocation2 + $0x8] sm:$0x3] }
 0x98a   :  { %1420 = vmatpush.msrb.mxu0 %v2132_v15  ;;  %1440 = vmatpush.msra.mxu1 %v2107_v5  ;;  %v708_v15 = vld [vmem:[#allocation2 + $0x10] sm:$0xc0] }
 0x98c   :  { %1421 = vmatpush.msrb.mxu0 %v2140_v17  ;;  %1441 = vmatpush.msra.mxu1 %v2111_v7 }
 0x98e   :  { %1422 = vmatpush.msrb.mxu0 %v2148_v19  ;;  %1442 = vmatpush.msra.mxu1 %v2117_v10 }
 0x990   :  { %1423 = vmatpush.msrb.mxu0 %v2158_v21  ;;  %1443 = vmatpush.msra.mxu1 %v2127_v13 }
 0x992   :  { %1424 = vmatpush.msrb.mxu0 %v2161_v23  ;;  %1444 = vmatpush.msra.mxu1 %v2135_v16 }
 0x994   :  { %1425 = vmatpush.msrb.mxu0 %v2167_v24  ;;  %1445 = vmatpush.msra.mxu1 %v2144_v18 }
 0xa02   :  { %v730_v0 = vpop.f32.mrf.mxu0  ;;  %v750_v2 = vpop.f32.mrf.mxu1 }
 0xa03   :  { %v776_v5 = vadd.f32 %v730_v0, %v2233_v40  ;;  %v809_v7 = vadd.f32 %v750_v2, %v2229_v36  ;;  %v754_v10 = vrot.slane %v730_v0, 2  ;;  %v789_v13 = vadd.f32 %v750_v2, %v709_v11 }
 0xa05   :  { %v778_v9 = vrot.slane %v776_v5, 2  ;;  %811 = vrot.lane.b32.xlu0 %v809_v7, %s2039_s3  ;;  %v756_v16 = vadd.f32 %v754_v10, %v708_v15  ;;  %v1720_v17 = vmul.f32 -1.442695, %v789_v13 }
 0xa07   :  { %779 = vrot.lane.b32.xlu1 %v778_v9, %s2039_s3  ;;  %v1719_v19 = vmul.f32 -1.442695, %v756_v16  ;;  %1815 = vpow2.f32 %v1720_v17 }
 0xa09   :  { %1817 = vpow2.f32 %v1719_v19 }
 0xa0d   :  { %v1816_v18 = vpop.eup %1815 }
 0xa0e   :  { %v793_v23 = vadd.f32 1.0, %v1816_v18 }
 0xa0f   :  { %v1818_v21 = vpop.eup %1817 }
 0xa10   :  { %v760_v24 = vadd.f32 1.0, %v1818_v21  ;;  %1819 = vrcp.f32 %v793_v23  ;;  %v805_v33 = vand.u32 2147483648, %v793_v23  ;;  %vm799_vm2 = vweird.f32 %v793_v23 }
 0xa11   :  { %v803_v34 = vand.u32 2147483647, %v793_v23 }
 0xa12   :  { %1821 = vrcp.f32 %v760_v24  ;;  %v772_v37 = vand.u32 2147483648, %v760_v24  ;;  %vm766_vm5 = vweird.f32 %v760_v24  ;;  %v770_v57 = vand.u32 2147483647, %v760_v24 }
 0xa13   :  { %v806_v41 = vor.u32 1.1754944e-38, %v805_v33  ;;  %vm804_vm10 = vcmp.eq.f32.partialorder %v803_v34, 8.507059e+37 }
 0xa14   :  { %v773_v45 = vor.u32 1.1754944e-38, %v772_v37  ;;  %vm771_vm9 = vcmp.eq.f32.partialorder %v770_v57, 8.507059e+37 }
 0xa16   :  { %v1820_v39 = vpop.eup %1819 }
 0xa17   :  { %v795_v25 = vmul.f32 %v1820_v39, %v793_v23  ;;  %vm800_vm1 = vweird.f32 %v1820_v39 }
 0xa18   :  { %v1822_v22 = vpop.eup %1821  ;;  %vm801_vm4 = vmor %vm799_vm2, %vm800_vm1 }
 0xa19   :  { %v762_v26 = vmul.f32 %v1822_v22, %v760_v24  ;;  %v796_v27 = vsub.f32 1.0, %v795_v25  ;;  %vm767_vm3 = vweird.f32 %v1822_v22 }
 0xa1a   :  { %vm768_vm6 = vmor %vm766_vm5, %vm767_vm3 }
 0xa1b   :  { %v763_v28 = vsub.f32 1.0, %v762_v26  ;;  %v797_v29 = vmul.f32 %v1820_v39, %v796_v27  ;;  %v875_v26 = vld [vmem:[#allocation2] sm:$0xc0] }
 0xa1d   :  { %v764_v30 = vmul.f32 %v1822_v22, %v763_v28  ;;  %v798_v31 = vadd.f32 %v1820_v39, %v797_v29 }
 0xa1f   :  { %v765_v35 = vadd.f32 %v1822_v22, %v764_v30  ;;  %v802_v38 = vsel %vm801_vm4, %v1820_v39, %v798_v31 }
 0xa20   :  { %v807_v44 = vsel %vm804_vm10, %v806_v41, %v802_v38  ;;  %vm849_vm10 = vcmp.gt.s32.totalorder %v2247_v49, 3 }
 0xa21   :  { %v769_v42 = vsel %vm768_vm6, %v1822_v22, %v765_v35 }
 0xa22   :  { %v774_v50 = vsel %vm771_vm9, %v773_v45, %v769_v42  ;;  %vm850_vm9 = vcmp.gt.s32.totalorder %v2247_v49, 4 }
 0xa77   :  { %v812_v43 = vpop.permute.xlu0 %811 }
 0xa78   :  { %v814_v46 = vmul.f32 %v812_v43, %v807_v44 }
 0xa79   :  { %v780_v47 = vpop.permute.xlu1 %779 }
 0xa7a   :  { %v782_v52 = vmul.f32 %v780_v47, %v774_v50  ;;  %816 = vrot.lane.b32.xlu1 %v814_v46, %s2039_s3 }
 0xa7c   :  { %784 = vrot.lane.b32.xlu2 %v782_v52, %s2039_s3 }
 0xad6   :  { %v785_v53 = vpop.permute.xlu2 %784 }
 0xad7   :  { %v787_v54 = vadd.f32 %v785_v53, %v708_v15 }
 0xad9   :  { %1823 = vtanh.f32 %v787_v54 }
 0xadf   :  { %v1824_v48 = vpop.eup %1823 }
 0xae0   :  { %v822_v55 = vrot.slane %v1824_v48, 6 }
 0xae2   :  { %823 = vrot.lane.b32.xlu2 %v822_v55, %s2039_s3 }
 0xaec   :  { %v817_v51 = vpop.permute.xlu1 %816 }
 0xaed   :  { %v819_v56 = vadd.f32 %v817_v51, %v709_v11 }
 0xaef   :  { %1825 = vtanh.f32 %v819_v56 }
 0xaf5   :  { %v1826_v58 = vpop.eup %1825 }
 0xaf6   :  { %839 = vrot.lane.b32.xlu1 %v1826_v58, %s2037_s23 }
 0xafe   :  { %865 = vrot.lane.b32.xlu1 %v2368_v3, %s2041_s30 }
 0xb3c   :  { %v824_v59 = vpop.permute.xlu2 %823 }
 0xb3d   :  { %v826_v60 = vsub.f32 %v2368_v3, %v824_v59 }
 0xb3f   :  { %v828_v61 = vrot.slane %v826_v60, 2 }
 0xb41   :  { %829 = vrot.lane.b32.xlu0 %v828_v61, %s2041_s30 }
 0xb68   :  { %v840_v62 = vpop.permute.xlu1 %839 }
 0xb69   :  { %v842_v63 = vsub.f32 %v2368_v3, %v840_v62 }
 0xb6b   :  { %v843_v1 = vmul.f32 %v842_v63, %v807_v44 }
 0xb6d   :  { %845 = vrot.lane.b32.xlu0 %v843_v1, %s2041_s30 }
 0xb70   :  { %v866_v20 = vpop.permute.xlu1 %865 }
 0xbb3   :  { %v830_v6 = vpop.permute.xlu0 %829 }
 0xbb4   :  { %v832_v8 = vmul.f32 %v830_v6, %v774_v50 }
 0xbb6   :  { %834 = vrot.lane.b32.xlu2 %v832_v8, %s2041_s30 }
 0xbdf   :  { %v846_v12 = vpop.permute.xlu0 %845 }
 0xbe0   :  { %v2405_v14 = vadd.f32 %v1826_v58, %v846_v12 }
 0xbe2   :  { %v868_v0 = vsel %vm850_vm9, %v2405_v14, %v866_v20 }
 0xbe3   :  { %870 = vrot.lane.b32.xlu0 %v868_v0, %s2037_s23 }
 0xc10   :  { %v835_v2 = vpop.permute.xlu2 %834 }
 0xc11   :  { %v837_v5 = vadd.f32 %v1824_v48, %v835_v2 }
 0xc13   :  { %v852_v7 = vrot.slane %v837_v5, 6 }
 0xc15   :  { %853 = vrot.lane.b32.xlu2 %v852_v7, %s2039_s3 }
 0xc55   :  { %v871_v10 = vpop.permute.xlu0 %870 }
 0xc6f   :  { %v854_v9 = vpop.permute.xlu2 %853 }
 0xc70   :  { %v856_v11 = vsel %vm849_vm10, %v854_v9, 0.0  ;;  %v864_v13 = vsel %vm849_vm10, %v854_v9, %v2368_v3  ;;  %v874_v3 = vld [vmem:[#allocation2 + $0x18] sm:$0x3] }
 0xc71   :  { %857 = vst.msk [vmem:[#allocation3 + $0x6] sm:$0x3] %vm2642_vm11, %v856_v11  ;;  %v2421_v15 = vsel %vm348_vm13, %v864_v13, %v871_v10 }
 0xc72   :  { %1721 = vmatmul.msk.f32.vlgmr.msrb.gmra.mxu2 %vm187_vm14, %v2421_v15  ;;  %1722 = vmatmul.msk.f32.vlgmr.msra.gmra.mxu3 %vm187_vm14, %v2421_v15 }
 0xcf5   :  { %v896_v16 = vpop.f32.mrf.mxu2  ;;  %v916_v17 = vpop.f32.mrf.mxu3 }
 0xcf6   :  { %v939_v19 = vadd.f32 %v896_v16, %v2233_v40  ;;  %v974_v18 = vadd.f32 %v916_v17, %v2229_v36  ;;  %v919_v23 = vadd.f32 %v896_v16, %v874_v3  ;;  %v952_v25 = vrot.slane %v916_v17, 2 }
 0xcf8   :  { %v976_v21 = vrot.slane %v974_v18, 2  ;;  %941 = vrot.lane.b32.xlu2 %v939_v19, %s2039_s3  ;;  %v1723_v24 = vmul.f32 -1.442695, %v919_v23  ;;  %v954_v27 = vadd.f32 %v952_v25, %v875_v26 }
 0xcfa   :  { %977 = vrot.lane.b32.xlu1 %v976_v21, %s2039_s3  ;;  %1827 = vpow2.f32 %v1723_v24  ;;  %v1724_v29 = vmul.f32 -1.442695, %v954_v27 }
 0xd00   :  { %v1828_v39 = vpop.eup %1827 }
 0xd01   :  { %v923_v22 = vadd.f32 1.0, %v1828_v39 }
 0xd03   :  { %1829 = vrcp.f32 %v923_v22  ;;  %v935_v38 = vand.u32 2147483648, %v923_v22  ;;  %vm929_vm2 = vweird.f32 %v923_v22  ;;  %v933_v57 = vand.u32 2147483647, %v923_v22 }
 0xd04   :  { %1831 = vpow2.f32 %v1724_v29 }
 0xd05   :  { %v936_v42 = vor.u32 1.1754944e-38, %v935_v38  ;;  %vm934_vm4 = vcmp.eq.f32.partialorder %v933_v57, 8.507059e+37 }
 0xd09   :  { %v1830_v28 = vpop.eup %1829 }
 0xd0a   :  { %v925_v30 = vmul.f32 %v1830_v28, %v923_v22  ;;  %v1832_v34 = vpop.eup %1831  ;;  %vm930_vm1 = vweird.f32 %v1830_v28 }
 0xd0b   :  { %v958_v37 = vadd.f32 1.0, %v1832_v34  ;;  %vm931_vm3 = vmor %vm929_vm2, %vm930_vm1  ;;  %v1051_v34 = vld [vmem:[#allocation2 + $0x18] sm:$0xc] }
 0xd0c   :  { %v926_v31 = vsub.f32 1.0, %v925_v30 }
 0xd0d   :  { %1833 = vrcp.f32 %v958_v37  ;;  %v970_v54 = vand.u32 2147483648, %v958_v37  ;;  %vm964_vm6 = vweird.f32 %v958_v37  ;;  %v968_v48 = vand.u32 2147483647, %v958_v37 }
 0xd0e   :  { %v927_v33 = vmul.f32 %v1830_v28, %v926_v31 }
 0xd0f   :  { %v971_v51 = vor.u32 1.1754944e-38, %v970_v54  ;;  %vm969_vm1 = vcmp.eq.f32.partialorder %v968_v48, 8.507059e+37 }
 0xd10   :  { %v928_v35 = vadd.f32 %v1830_v28, %v927_v33 }
 0xd12   :  { %v932_v41 = vsel %vm931_vm3, %v1830_v28, %v928_v35 }
 0xd13   :  { %v937_v44 = vsel %vm934_vm4, %v936_v42, %v932_v41  ;;  %v1834_v46 = vpop.eup %1833 }
 0xd14   :  { %v960_v47 = vmul.f32 %v1834_v46, %v958_v37  ;;  %vm965_vm5 = vweird.f32 %v1834_v46  ;;  %v1052_v37 = vld [vmem:[#allocation2] sm:$0x30] }
 0xd15   :  { %vm966_vm11 = vmor %vm964_vm6, %vm965_vm5 }
 0xd16   :  { %v961_v50 = vsub.f32 1.0, %v960_v47 }
 0xd18   :  { %v962_v52 = vmul.f32 %v1834_v46, %v961_v50 }
 0xd1a   :  { %v963_v53 = vadd.f32 %v1834_v46, %v962_v52 }
 0xd1c   :  { %v967_v55 = vsel %vm966_vm11, %v1834_v46, %v963_v53 }
 0xd1d   :  { %v972_v58 = vsel %vm969_vm1, %v971_v51, %v967_v55 }
 0xd52   :  { %v942_v43 = vpop.permute.xlu2 %941 }
 0xd53   :  { %v944_v45 = vmul.f32 %v942_v43, %v937_v44 }
 0xd55   :  { %946 = vrot.lane.b32.xlu1 %v944_v45, %s2039_s3 }
 0xd6c   :  { %v978_v56 = vpop.permute.xlu1 %977 }
 0xd6d   :  { %v980_v59 = vmul.f32 %v978_v56, %v972_v58 }
 0xd6f   :  { %982 = vrot.lane.b32.xlu0 %v980_v59, %s2039_s3 }
 0xdc7   :  { %v947_v60 = vpop.permute.xlu1 %946 }
 0xdc8   :  { %v949_v61 = vadd.f32 %v947_v60, %v874_v3 }
 0xdca   :  { %1835 = vtanh.f32 %v949_v61 }
 0xdd0   :  { %v1836_v62 = vpop.eup %1835 }
 0xdd1   :  { %988 = vrot.lane.b32.xlu0 %v1836_v62, %s2039_s3 }
 0xde1   :  { %v983_v63 = vpop.permute.xlu0 %982 }
 0xde2   :  { %v985_v1 = vadd.f32 %v983_v63, %v875_v26 }
 0xde4   :  { %1837 = vtanh.f32 %v985_v1 }
 0xdea   :  { %v1838_v6 = vpop.eup %1837 }
 0xdeb   :  { %v1003_v8 = vrot.slane %v1838_v6, 6 }
 0xded   :  { %1004 = vrot.lane.b32.xlu2 %v1003_v8, %s2037_s23 }
 0xe43   :  { %v989_v12 = vpop.permute.xlu0 %988 }
 0xe44   :  { %v991_v20 = vsub.f32 %v2421_v15, %v989_v12 }
 0xe46   :  { %993 = vrot.lane.b32.xlu1 %v991_v20, %s2041_s30 }
 0xe47   :  { %v1005_v0 = vpop.permute.xlu2 %1004 }
 0xe48   :  { %v1007_v2 = vsub.f32 %v2421_v15, %v1005_v0 }
 0xe4a   :  { %v1009_v5 = vrot.slane %v1007_v2, 2 }
 0xe4c   :  { %v1011_v7 = vmul.f32 %v1009_v5, %v972_v58 }
 0xe4e   :  { %1013 = vrot.lane.b32.xlu2 %v1011_v7, %s2041_s30 }
 0xe56   :  { %1034 = vrot.lane.b32.xlu2 %v2421_v15, %s2039_s3 }
 0xea8   :  { %v1014_v9 = vpop.permute.xlu2 %1013 }
 0xea9   :  { %v1016_v10 = vadd.f32 %v1838_v6, %v1014_v9 }
 0xeab   :  { %v1024_v11 = vrot.slane %v1016_v10, 6 }
 0xead   :  { %1025 = vrot.lane.b32.xlu1 %v1024_v11, %s2039_s3 }
 0xeb0   :  { %v1035_v18 = vpop.permute.xlu2 %1034 }
 0xeb8   :  { %v994_v13 = vpop.permute.xlu1 %993 }
 0xeb9   :  { %v996_v16 = vmul.f32 %v994_v13, %v937_v44 }
 0xebb   :  { %998 = vrot.lane.b32.xlu0 %v996_v16, %s2041_s30 }
 0xec3   :  { %1038 = vrot.lane.b32.xlu0 %v2421_v15, %s2037_s23 }
 0xf1f   :  { %v2451_v3 = vpop.permute.xlu1 %1025 }
 0xf2d   :  { %v999_v17 = vpop.permute.xlu0 %998 }
 0xf2e   :  { %v2445_v19 = vadd.f32 %v1836_v62, %v999_v17 }
 0xf30   :  { %v1037_v21 = vsel %vm850_vm9, %v2445_v19, %v1035_v18 }
 0xf31   :  { %1043 = vrot.lane.b32.xlu1 %v1037_v21, %s2039_s3 }
 0xf35   :  { %v1039_v23 = vpop.permute.xlu0 %1038 }
 0xf36   :  { %v1041_v24 = vsel %vm849_vm10, %v2451_v3, %v1039_v23 }
 0xf37   :  { %1047 = vrot.lane.b32.xlu2 %v1041_v24, %s2041_s30 }
 0xf91   :  { %v1048_v15 = vpop.permute.xlu2 %1047 }
 0xfa3   :  { %v1044_v39 = vpop.permute.xlu1 %1043 }
 0xfa4   :  { %v2458_v22 = vsel %vm348_vm13, %v1044_v39, %v1048_v15 }
 0xfa5   :  { %1725 = vmatmul.msk.f32.vlgmr.msra.gmra.mxu0 %vm187_vm14, %v2458_v22  ;;  %1726 = vmatmul.msk.f32.vlgmr.msrb.gmra.mxu1 %vm187_vm14, %v2458_v22 }
0x1022   :  { %v1073_v25 = vpop.f32.mrf.mxu0  ;;  %v1093_v26 = vpop.f32.mrf.mxu1 }
0x1023   :  { %v1119_v27 = vadd.f32 %v1073_v25, %v2233_v40  ;;  %v1155_v28 = vadd.f32 %v1093_v26, %v2229_v36  ;;  %v1097_v31 = vrot.slane %v1073_v25, 6  ;;  %v1133_v33 = vrot.slane %v1093_v26, 4 }
0x1025   :  { %v1121_v29 = vrot.slane %v1119_v27, 6  ;;  %v1157_v30 = vrot.slane %v1155_v28, 4  ;;  %v1099_v35 = vadd.f32 %v1097_v31, %v1051_v34  ;;  %v1135_v38 = vadd.f32 %v1133_v33, %v1052_v37 }
0x1027   :  { %1158 = vrot.lane.b32.xlu1 %v1157_v30, %s2039_s3  ;;  %1122 = vrot.lane.b32.xlu0 %v1121_v29, %s2039_s3  ;;  %v1727_v57 = vmul.f32 -1.442695, %v1099_v35  ;;  %v1728_v41 = vmul.f32 -1.442695, %v1135_v38 }
0x1029   :  { %1839 = vpow2.f32 %v1727_v57 }
0x102a   :  { %1841 = vpow2.f32 %v1728_v41 }
0x102f   :  { %v1840_v42 = vpop.eup %1839 }
0x1030   :  { %v1842_v43 = vpop.eup %1841  ;;  %v1103_v44 = vadd.f32 1.0, %v1840_v42 }
0x1031   :  { %v1139_v45 = vadd.f32 1.0, %v1842_v43 }
0x1032   :  { %1843 = vrcp.f32 %v1103_v44  ;;  %vm1109_vm3 = vweird.f32 %v1103_v44  ;;  %v1115_v59 = vand.u32 2147483648, %v1103_v44  ;;  %v1113_v61 = vand.u32 2147483647, %v1103_v44 }
0x1033   :  { %1845 = vrcp.f32 %v1139_v45  ;;  %v1151_v58 = vand.u32 2147483648, %v1139_v45  ;;  %vm1145_vm4 = vweird.f32 %v1139_v45  ;;  %v1149_v60 = vand.u32 2147483647, %v1139_v45 }
0x1034   :  { %v1116_v6 = vor.u32 1.1754944e-38, %v1115_v59  ;;  %vm1114_vm12 = vcmp.eq.f32.partialorder %v1113_v61, 8.507059e+37  ;;  %v1228_v59 = vld [vmem:[#allocation2 + $0x18] sm:$0x30] }
0x1035   :  { %v1152_v1 = vor.u32 1.1754944e-38, %v1151_v58  ;;  %vm1150_vm1 = vcmp.eq.f32.partialorder %v1149_v60, 8.507059e+37 }
0x1038   :  { %v1844_v46 = vpop.eup %1843 }
0x1039   :  { %v1846_v47 = vpop.eup %1845  ;;  %v1105_v52 = vmul.f32 %v1844_v46, %v1103_v44  ;;  %vm1110_vm11 = vweird.f32 %v1844_v46 }
0x103a   :  { %v1141_v50 = vmul.f32 %v1846_v47, %v1139_v45  ;;  %vm1146_vm2 = vweird.f32 %v1846_v47  ;;  %vm1111_vm5 = vmor %vm1109_vm3, %vm1110_vm11 }
0x103b   :  { %v1106_v54 = vsub.f32 1.0, %v1105_v52  ;;  %vm1147_vm6 = vmor %vm1145_vm4, %vm1146_vm2 }
0x103c   :  { %v1142_v53 = vsub.f32 1.0, %v1141_v50 }
0x103d   :  { %v1107_v55 = vmul.f32 %v1844_v46, %v1106_v54  ;;  %v1229_v54 = vld [vmem:[#allocation2] sm:$0xc] }
0x103e   :  { %v1143_v48 = vmul.f32 %v1846_v47, %v1142_v53 }
0x103f   :  { %v1108_v56 = vadd.f32 %v1844_v46, %v1107_v55 }
0x1040   :  { %v1144_v51 = vadd.f32 %v1846_v47, %v1143_v48 }
0x1041   :  { %v1112_v63 = vsel %vm1111_vm5, %v1844_v46, %v1108_v56 }
0x1042   :  { %v1148_v62 = vsel %vm1147_vm6, %v1846_v47, %v1144_v51  ;;  %v1117_v0 = vsel %vm1114_vm12, %v1116_v6, %v1112_v63 }
0x1043   :  { %v1153_v12 = vsel %vm1150_vm1, %v1152_v1, %v1148_v62 }
0x1099   :  { %v1159_v8 = vpop.permute.xlu1 %1158  ;;  %v1123_v20 = vpop.permute.xlu0 %1122 }
0x109a   :  { %v1161_v2 = vmul.f32 %v1159_v8, %v1153_v12  ;;  %v1125_v5 = vmul.f32 %v1123_v20, %v1117_v0 }
0x109c   :  { %1163 = vrot.lane.b32.xlu0 %v1161_v2, %s2039_s3  ;;  %1127 = vrot.lane.b32.xlu2 %v1125_v5, %s2039_s3 }
0x10f6   :  { %v1128_v7 = vpop.permute.xlu2 %1127 }
0x10f7   :  { %v1130_v9 = vadd.f32 %v1128_v7, %v1051_v34 }
0x10f9   :  { %1847 = vtanh.f32 %v1130_v9 }
0x10ff   :  { %v1848_v10 = vpop.eup %1847 }
0x1100   :  { %v1169_v11 = vrot.slane %v1848_v10, 2 }
0x1102   :  { %1170 = vrot.lane.b32.xlu1 %v1169_v11, %s2039_s3 }
0x110e   :  { %v1164_v13 = vpop.permute.xlu0 %1163 }
0x110f   :  { %v1166_v16 = vadd.f32 %v1164_v13, %v1052_v37 }
0x1111   :  { %1849 = vtanh.f32 %v1166_v16 }
0x1117   :  { %v1850_v17 = vpop.eup %1849 }
0x1118   :  { %v1186_v18 = vrot.slane %v1850_v17, 4 }
0x111a   :  { %1187 = vrot.lane.b32.xlu2 %v1186_v18, %s2037_s23 }
0x1174   :  { %v1171_v21 = vpop.permute.xlu1 %1170  ;;  %v1188_v23 = vpop.permute.xlu2 %1187 }
0x1175   :  { %v1173_v24 = vsub.f32 %v2458_v22, %v1171_v21  ;;  %v1190_v15 = vsub.f32 %v2458_v22, %v1188_v23 }
0x1177   :  { %v1175_v39 = vrot.slane %v1173_v24, 6  ;;  %v1192_v25 = vrot.slane %v1190_v15, 4 }
0x1179   :  { %v1194_v26 = vmul.f32 %v1192_v25, %v1153_v12  ;;  %1176 = vrot.lane.b32.xlu0 %v1175_v39, %s2041_s30 }
0x117b   :  { %1196 = vrot.lane.b32.xlu1 %v1194_v26, %s2041_s30 }
0x1183   :  { %1219 = vrot.lane.b32.xlu1 %v2458_v22, %s2037_s23 }
0x11eb   :  { %v1177_v27 = vpop.permute.xlu0 %1176 }
0x11ec   :  { %v1179_v28 = vmul.f32 %v1177_v27, %v1117_v0 }
0x11ed   :  { %v1197_v29 = vpop.permute.xlu1 %1196 }
0x11ee   :  { %v1199_v30 = vadd.f32 %v1850_v17, %v1197_v29  ;;  %1181 = vrot.lane.b32.xlu2 %v1179_v28, %s2041_s30 }
0x11f0   :  { %v1208_v31 = vrot.slane %v1199_v30, 4 }
0x11f2   :  { %1209 = vrot.lane.b32.xlu0 %v1208_v31, %s2039_s3 }
0x11f5   :  { %v1220_v37 = vpop.permute.xlu1 %1219 }
0x1248   :  { %v1182_v33 = vpop.permute.xlu2 %1181 }
0x1249   :  { %v1184_v34 = vadd.f32 %v1848_v10, %v1182_v33 }
0x124b   :  { %v1201_v35 = vrot.slane %v1184_v34, 2 }
0x124d   :  { %1202 = vrot.lane.b32.xlu2 %v1201_v35, %s2039_s3 }
0x1264   :  { %v2481_v38 = vpop.permute.xlu0 %1209 }
0x1265   :  { %v1222_v57 = vsel %vm678_vm0, %v2481_v38, %v1220_v37 }
0x1266   :  { %1224 = vrot.lane.b32.xlu0 %v1222_v57, %s2041_s30 }
0x12a7   :  { %v2487_v41 = vpop.permute.xlu2 %1202 }
0x12a8   :  { %v1218_v42 = vsel %vm679_vm15, %v2487_v41, %v2458_v22 }
0x12d8   :  { %v1225_v43 = vpop.permute.xlu0 %1224 }
0x12d9   :  { %v2494_v44 = vsel %vm348_vm13, %v1218_v42, %v1225_v43 }
0x12da   :  { %1729 = vmatmul.msk.f32.vlgmr.msra.gmra.mxu2 %vm187_vm14, %v2494_v44  ;;  %1730 = vmatmul.msk.f32.vlgmr.msrb.gmra.mxu3 %vm187_vm14, %v2494_v44 }
0x135d   :  { %v1250_v45 = vpop.f32.mrf.mxu2  ;;  %v1270_v46 = vpop.f32.mrf.mxu3 }
0x135e   :  { %v1296_v47 = vadd.f32 %v1250_v45, %v2233_v40  ;;  %v1332_v50 = vadd.f32 %v1270_v46, %v2229_v36  ;;  %v1310_v22 = vrot.slane %v1270_v46, 6  ;;  %v1274_v58 = vrot.slane %v1250_v45, 4 }
0x1360   :  { %v1298_v52 = vrot.slane %v1296_v47, 4  ;;  %v1334_v53 = vrot.slane %v1332_v50, 6  ;;  %v1312_v48 = vadd.f32 %v1310_v22, %v1229_v54  ;;  %v1276_v60 = vadd.f32 %v1274_v58, %v1228_v59 }
0x1362   :  { %1335 = vrot.lane.b32.xlu2 %v1334_v53, %s2039_s3  ;;  %1299 = vrot.lane.b32.xlu1 %v1298_v52, %s2039_s3  ;;  %v1732_v55 = vmul.f32 -1.442695, %v1312_v48  ;;  %v1731_v62 = vmul.f32 -1.442695, %v1276_v60 }
0x1364   :  { %1851 = vpow2.f32 %v1732_v55 }
0x136a   :  { %v1852_v51 = vpop.eup %1851 }
0x136b   :  { %v1316_v56 = vadd.f32 1.0, %v1852_v51 }
0x136d   :  { %1853 = vrcp.f32 %v1316_v56  ;;  %v1328_v0 = vand.u32 2147483648, %v1316_v56  ;;  %vm1322_vm11 = vweird.f32 %v1316_v56  ;;  %v1326_v2 = vand.u32 2147483647, %v1316_v56 }
0x136e   :  { %1855 = vpow2.f32 %v1731_v62 }
0x136f   :  { %v1329_v7 = vor.u32 1.1754944e-38, %v1328_v0  ;;  %vm1327_vm3 = vcmp.eq.f32.partialorder %v1326_v2, 8.507059e+37  ;;  %v1405_v2 = vld [vmem:[#allocation2 + $0x18] sm:$0xc0] }
0x1373   :  { %v1854_v61 = vpop.eup %1853 }
0x1374   :  { %v1318_v63 = vmul.f32 %v1854_v61, %v1316_v56  ;;  %v1856_v6 = vpop.eup %1855  ;;  %vm1323_vm12 = vweird.f32 %v1854_v61 }
0x1375   :  { %v1280_v12 = vadd.f32 1.0, %v1856_v6  ;;  %vm1324_vm2 = vmor %vm1322_vm11, %vm1323_vm12 }
0x1376   :  { %v1319_v1 = vsub.f32 1.0, %v1318_v63 }
0x1377   :  { %1857 = vrcp.f32 %v1280_v12  ;;  %v1292_v23 = vand.u32 2147483648, %v1280_v12  ;;  %vm1286_vm5 = vweird.f32 %v1280_v12  ;;  %v1290_v24 = vand.u32 2147483647, %v1280_v12 }
0x1378   :  { %v1320_v8 = vmul.f32 %v1854_v61, %v1319_v1 }
0x1379   :  { %v1293_v39 = vor.u32 1.1754944e-38, %v1292_v23  ;;  %vm1291_vm1 = vcmp.eq.f32.partialorder %v1290_v24, 8.507059e+37 }
0x137a   :  { %v1321_v20 = vadd.f32 %v1854_v61, %v1320_v8 }
0x137c   :  { %v1325_v5 = vsel %vm1324_vm2, %v1854_v61, %v1321_v20 }
0x137d   :  { %v1330_v10 = vsel %vm1327_vm3, %v1329_v7, %v1325_v5  ;;  %v1858_v13 = vpop.eup %1857 }
0x137e   :  { %v1282_v16 = vmul.f32 %v1858_v13, %v1280_v12  ;;  %vm1287_vm4 = vweird.f32 %v1858_v13 }
0x137f   :  { %vm1288_vm6 = vmor %vm1286_vm5, %vm1287_vm4 }
0x1380   :  { %v1283_v17 = vsub.f32 1.0, %v1282_v16 }
0x1382   :  { %v1284_v18 = vmul.f32 %v1858_v13, %v1283_v17 }
0x1384   :  { %v1285_v21 = vadd.f32 %v1858_v13, %v1284_v18 }
0x1386   :  { %v1289_v15 = vsel %vm1288_vm6, %v1858_v13, %v1285_v21 }
0x1387   :  { %v1294_v26 = vsel %vm1291_vm1, %v1293_v39, %v1289_v15 }
0x13bc   :  { %v1336_v9 = vpop.permute.xlu2 %1335 }
0x13bd   :  { %v1338_v11 = vmul.f32 %v1336_v9, %v1330_v10 }
0x13bf   :  { %1340 = vrot.lane.b32.xlu1 %v1338_v11, %s2039_s3  ;;  %v1406_v11 = vld [vmem:[#allocation2] sm:$0x3] }
0x13d4   :  { %v1300_v25 = vpop.permute.xlu1 %1299 }
0x13d5   :  { %v1302_v27 = vmul.f32 %v1300_v25, %v1294_v26 }
0x13d7   :  { %1304 = vrot.lane.b32.xlu0 %v1302_v27, %s2039_s3 }
0x1431   :  { %v1341_v28 = vpop.permute.xlu1 %1340 }
0x1432   :  { %v1343_v29 = vadd.f32 %v1341_v28, %v1229_v54 }
0x1434   :  { %1859 = vtanh.f32 %v1343_v29 }
0x143a   :  { %v1860_v30 = vpop.eup %1859 }
0x143b   :  { %v1363_v31 = vrot.slane %v1860_v30, 2 }
0x143d   :  { %1364 = vrot.lane.b32.xlu0 %v1363_v31, %s2037_s23 }
0x1449   :  { %v1305_v33 = vpop.permute.xlu0 %1304 }
0x144a   :  { %v1307_v34 = vadd.f32 %v1305_v33, %v1228_v59 }
0x144c   :  { %1861 = vtanh.f32 %v1307_v34 }
0x1452   :  { %v1862_v35 = vpop.eup %1861 }
0x1453   :  { %v1346_v37 = vrot.slane %v1862_v35, 4 }
0x1455   :  { %1347 = vrot.lane.b32.xlu2 %v1346_v37, %s2039_s3 }
0x14af   :  { %v1348_v57 = vpop.permute.xlu2 %1347  ;;  %v1365_v42 = vpop.permute.xlu0 %1364 }
0x14b0   :  { %v1350_v43 = vsub.f32 %v2494_v44, %v1348_v57  ;;  %v1367_v45 = vsub.f32 %v2494_v44, %v1365_v42 }
0x14b2   :  { %v1352_v46 = vrot.slane %v1350_v43, 4  ;;  %v1369_v47 = vrot.slane %v1367_v45, 6 }
0x14b4   :  { %v1371_v50 = vmul.f32 %v1369_v47, %v1330_v10  ;;  %1353 = vrot.lane.b32.xlu1 %v1352_v46, %s2041_s30 }
0x14b6   :  { %1373 = vrot.lane.b32.xlu2 %v1371_v50, %s2041_s30 }
0x14be   :  { %1396 = vrot.lane.b32.xlu2 %v2494_v44, %s2037_s23 }
0x1510   :  { %v1374_v52 = vpop.permute.xlu2 %1373 }
0x1511   :  { %v1376_v53 = vadd.f32 %v1860_v30, %v1374_v52 }
0x1513   :  { %v1385_v22 = vrot.slane %v1376_v53, 2 }
0x1515   :  { %1386 = vrot.lane.b32.xlu1 %v1385_v22, %s2039_s3 }
0x1518   :  { %v1397_v55 = vpop.permute.xlu2 %1396 }
0x1526   :  { %v1354_v54 = vpop.permute.xlu1 %1353 }
0x1527   :  { %v1356_v48 = vmul.f32 %v1354_v54, %v1294_v26 }
0x1529   :  { %1358 = vrot.lane.b32.xlu0 %v1356_v48, %s2041_s30 }
0x1587   :  { %v2516_v51 = vpop.permute.xlu1 %1386 }
0x1588   :  { %v1399_v56 = vsel %vm499_vm8, %v2516_v51, %v1397_v55 }
0x1589   :  { %1401 = vrot.lane.b32.xlu1 %v1399_v56, %s2041_s30 }
0x159b   :  { %v1359_v58 = vpop.permute.xlu0 %1358 }
0x159c   :  { %v1361_v59 = vadd.f32 %v1862_v35, %v1359_v58 }
0x159e   :  { %v1378_v60 = vrot.slane %v1361_v59, 4 }
0x15a0   :  { %1379 = vrot.lane.b32.xlu0 %v1378_v60, %s2039_s3 }
0x15fb   :  { %v1402_v62 = vpop.permute.xlu1 %1401 }
0x1612   :  { %v2523_v61 = vpop.permute.xlu0 %1379 }
0x1613   :  { %v1395_v63 = vsel %vm500_vm7, %v2523_v61, %v2494_v44 }
0x1614   :  { %v2530_v1 = vsel %vm348_vm13, %v1395_v63, %v1402_v62 }
0x1615   :  { %1733 = vmatmul.msk.f32.vlgmr.msrb.gmra.mxu0 %vm187_vm14, %v2530_v1  ;;  %1734 = vmatmul.msk.f32.vlgmr.msra.gmra.mxu1 %vm187_vm14, %v2530_v1 }
0x1692   :  { %v1427_v6 = vpop.f32.mrf.mxu0  ;;  %v1447_v8 = vpop.f32.mrf.mxu1 }
0x1693   :  { %v1473_v12 = vadd.f32 %v1427_v6, %v2233_v40  ;;  %v1506_v20 = vadd.f32 %v1447_v8, %v2229_v36  ;;  %v1451_v44 = vrot.slane %v1427_v6, 2  ;;  %v1486_v13 = vadd.f32 %v1447_v8, %v1406_v11 }
0x1694   :  { %v1028_v6 = vsel %vm849_vm10, %v2451_v3, 0.0  ;;  %v1389_v8 = vsel %vm499_vm8, %v2516_v51, 0.0  ;;  %v858_v3 = vsel %vm850_vm9, %v2405_v14, 0.0  ;;  %vm2644_vm8 = vcmask 517376  }
0x1695   :  { %v1475_v0 = vrot.slane %v1473_v12, 2  ;;  %1508 = vrot.lane.b32.xlu0 %v1506_v20, %s2039_s3  ;;  %v1453_v5 = vadd.f32 %v1451_v44, %v1405_v2  ;;  %v1736_v16 = vmul.f32 -1.442695, %v1486_v13  ;;  %v1573_v12 = vld [vmem:[#allocation10 + $0x20] sm:$0xff]  ;;  %v1574_v20 = vld [vmem:[#allocation10 + $0x28] sm:$0xff]  ;;  %v1576_v44 = vld [vmem:[#allocation10 + $0x38] sm:$0xff] }
0x1696   :  { %1593 = vmatpush.msrb.mxu2 %v1576_v44  ;;  %vm2645_vm10 = vcmp.gt.s32.totalorder %v2247_v49, 0 }
0x1697   :  { %1476 = vrot.lane.b32.xlu2 %v1475_v0, %s2039_s3  ;;  %v1735_v7 = vmul.f32 -1.442695, %v1453_v5  ;;  %v1761_v0 = vpack.i.bf16 %v1573_v12, %v1574_v20 }
0x1699   :  { %1863 = vpow2.f32 %v1735_v7 }
0x169f   :  { %v1864_v9 = vpop.eup %1863 }
0x16a0   :  { %v1457_v10 = vadd.f32 1.0, %v1864_v9  ;;  %v1212_v9 = vsel %vm678_vm0, %v2481_v38, 0.0  ;;  %v692_v38 = vsel %vm679_vm15, %v2353_v4, 0.0  ;;  %vm2646_vm0 = vmmov %vm2644_vm8 }
0x16a2   :  { %1865 = vrcp.f32 %v1457_v10  ;;  %v1469_v15 = vand.u32 2147483648, %v1457_v10  ;;  %vm1463_vm11 = vweird.f32 %v1457_v10  ;;  %v1467_v39 = vand.u32 2147483647, %v1457_v10 }
0x16a3   :  { %1867 = vpow2.f32 %v1736_v16 }
0x16a4   :  { %v1470_v26 = vor.u32 1.1754944e-38, %v1469_v15  ;;  %vm1468_vm3 = vcmp.eq.f32.partialorder %v1467_v39, 8.507059e+37  ;;  %v1570_v15 = vld [vmem:[#allocation10 + $0x8] sm:$0xff]  ;;  %v1569_v39 = vld [vmem:[#allocation10] sm:$0xff] }
0x16a8   :  { %v1866_v17 = vpop.eup %1865 }
0x16a9   :  { %v1459_v40 = vmul.f32 %v1866_v17, %v1457_v10  ;;  %v1868_v18 = vpop.eup %1867  ;;  %vm1464_vm12 = vweird.f32 %v1866_v17 }
0x16aa   :  { %v1490_v23 = vadd.f32 1.0, %v1868_v18  ;;  %vm1465_vm2 = vmor %vm1463_vm11, %vm1464_vm12 }
0x16ab   :  { %v1460_v36 = vsub.f32 1.0, %v1459_v40  ;;  %vm2647_vm12 = vmmov %vm2646_vm0 }
0x16ac   :  { %1869 = vrcp.f32 %v1490_v23  ;;  %v1502_v37 = vand.u32 2147483648, %v1490_v23  ;;  %vm1496_vm5 = vweird.f32 %v1490_v23  ;;  %v1500_v57 = vand.u32 2147483647, %v1490_v23  ;;  %vm2648_vm11 = vmmov %vm2645_vm10 }
0x16ad   :  { %v1461_v21 = vmul.f32 %v1866_v17, %v1460_v36  ;;  %v513_v36 = vsel %vm500_vm7, %v2298_v32, 0.0 }
0x16ae   :  { %v1503_v43 = vor.u32 1.1754944e-38, %v1502_v37  ;;  %vm1501_vm1 = vcmp.eq.f32.partialorder %v1500_v57, 8.507059e+37  ;;  %v1205_v57 = vsel %vm679_vm15, %v2487_v41, 0.0  ;;  %vm2656_vm15 = vcmp.gt.s32.totalorder %v2247_v49, 7 }
0x16af   :  { %v1462_v24 = vadd.f32 %v1866_v17, %v1461_v21  ;;  %v1017_v21 = vsel %vm850_vm9, %v2445_v19, 0.0  ;;  %vm2649_vm9 = vmmov %vm2646_vm0 }
0x16b1   :  { %v1466_v25 = vsel %vm1465_vm2, %v1866_v17, %v1462_v24  ;;  %v1571_v24 = vld [vmem:[#allocation10 + $0x10] sm:$0xff]  ;;  %vm2650_vm2 = vmmov %vm2646_vm0 }
0x16b2   :  { %v1870_v27 = vpop.eup %1869  ;;  %v1471_v29 = vsel %vm1468_vm3, %v1470_v26, %v1466_v25  ;;  %vm2651_vm3 = vmmov %vm2646_vm0 }
0x16b3   :  { %v1492_v31 = vmul.f32 %v1870_v27, %v1490_v23  ;;  %vm1497_vm4 = vweird.f32 %v1870_v27  ;;  %v1572_v23 = vld [vmem:[#allocation10 + $0x18] sm:$0xff] }
0x16b4   :  { %vm1498_vm6 = vmor %vm1496_vm5, %vm1497_vm4  ;;  %v1766_v32 = vpack.i.bf16 %v1571_v24, %v1572_v23  ;;  %vm2652_vm4 = vcmask 254976  }
0x16b5   :  { %v1493_v33 = vsub.f32 1.0, %v1492_v31  ;;  %vm2653_vm5 = vmmov %vm2646_vm0 }
0x16b7   :  { %v1494_v34 = vmul.f32 %v1870_v27, %v1493_v33 }
0x16b9   :  { %v1495_v35 = vadd.f32 %v1870_v27, %v1494_v34 }
0x16bb   :  { %v1499_v42 = vsel %vm1498_vm6, %v1870_v27, %v1495_v35  ;;  %vm2654_vm6 = vmmov %vm2652_vm4 }
0x16bc   :  { %v1504_v46 = vsel %vm1501_vm1, %v1503_v43, %v1499_v42  ;;  %vm2655_vm1 = vmmov %vm2652_vm4 }
0x16f1   :  { %v1477_v28 = vpop.permute.xlu2 %1476 }
0x16f2   :  { %v1479_v30 = vmul.f32 %v1477_v28, %v1471_v29  ;;  %v1771_v28 = vpack.i.bf16 %v1569_v39, %v1570_v15 }
0x16f4   :  { %1481 = vrot.lane.b32.xlu1 %v1479_v30, %s2039_s3 }
0x1707   :  { %v1509_v45 = vpop.permute.xlu0 %1508 }
0x1708   :  { %v1511_v47 = vmul.f32 %v1509_v45, %v1504_v46  ;;  %v1382_v45 = vsel %vm500_vm7, %v2523_v61, 0.0  ;;  %vm2658_vm7 = vmmov %vm2656_vm15 }
0x170a   :  { %1513 = vrot.lane.b32.xlu2 %v1511_v47, %s2039_s3 }
0x1764   :  { %v1514_v50 = vpop.permute.xlu2 %1513 }
0x1765   :  { %v1516_v52 = vadd.f32 %v1514_v50, %v1406_v11 }
0x1766   :  { %v1482_v53 = vpop.permute.xlu1 %1481 }
0x1767   :  { %1871 = vtanh.f32 %v1516_v52  ;;  %v1484_v22 = vadd.f32 %v1482_v53, %v1405_v2  ;;  %v1575_v2 = vld [vmem:[#allocation10 + $0x30] sm:$0xff] }
0x1768   :  { %1594 = vmatpush.msrb.mxu2 %v1575_v2  ;;  %v1756_v14 = vpack.i.bf16 %v1575_v2, %v1576_v44 }
0x1769   :  { %1873 = vtanh.f32 %v1484_v22 }
0x176a   :  { %1595 = vmatpush.msrb.mxu2 %v1574_v20 }
0x176c   :  { %1596 = vmatpush.msrb.mxu2 %v1573_v12 }
0x176d   :  { %v1872_v54 = vpop.eup %1871 }
0x176e   :  { %1536 = vrot.lane.b32.xlu1 %v1872_v54, %s2037_s23  ;;  %1597 = vmatpush.msrb.mxu2 %v1572_v23 }
0x176f   :  { %v2543_v48 = vpop.eup %1873 }
0x1770   :  { %v1519_v55 = vrot.slane %v2543_v48, 6  ;;  %1598 = vmatpush.msrb.mxu2 %v1571_v24 }
0x1772   :  { %1520 = vrot.lane.b32.xlu0 %v1519_v55, %s2039_s3  ;;  %1599 = vmatpush.msrb.mxu2 %v1570_v15 }
0x1774   :  { %1600 = vmatpush.msrb.mxu2 %v1569_v39 }
0x17e0   :  { %v1537_v56 = vpop.permute.xlu1 %1536 }
0x17e1   :  { %v1539_v58 = vsub.f32 %v2530_v1, %v1537_v56 }
0x17e3   :  { %v1540_v59 = vmul.f32 %v1539_v58, %v1504_v46 }
0x17e4   :  { %v1521_v60 = vpop.permute.xlu0 %1520 }
0x17e5   :  { %v1523_v62 = vsub.f32 %v2530_v1, %v1521_v60  ;;  %1542 = vrot.lane.b32.xlu0 %v1540_v59, %s2041_s30 }
0x17e7   :  { %v1525_v63 = vrot.slane %v1523_v62, 2 }
0x17e9   :  { %1526 = vrot.lane.b32.xlu2 %v1525_v63, %s2041_s30 }
0x17ed   :  { %1030 = vrot.lane.b32.xlu0 %v1028_v6, %s2041_s30 }
0x17f1   :  { %1560 = vrot.lane.b32.xlu2 %v2530_v1, %s2041_s30 }
0x17f9   :  { %1391 = vrot.lane.b32.xlu2 %v1389_v8, %s2041_s30 }
0x1801   :  { %1762 = vrot.lane.b32.xlu2 %v1761_v0, %s2039_s3 }
0x1809   :  { %860 = vrot.lane.b32.xlu2 %v858_v3, %s2037_s23 }
0x1811   :  { %1767 = vrot.lane.b32.xlu2 %v1766_v32, %s2039_s3 }
0x1843   :  { %v1527_v51 = vpop.permute.xlu2 %1526 }
0x1844   :  { %v1529_v5 = vmul.f32 %v1527_v51, %v1471_v29 }
0x1846   :  { %1531 = vrot.lane.b32.xlu1 %v1529_v5, %s2041_s30 }
0x184b   :  { %v1561_v7 = vpop.permute.xlu2 %1560 }
0x184e   :  { %1214 = vrot.lane.b32.xlu1 %v1212_v9, %s2041_s30 }
0x1853   :  { %v1392_v10 = vpop.permute.xlu2 %1391 }
0x1854   :  { %1394 = vst.msk [vmem:[#allocation3 + $0x2] sm:$0x3] %vm2644_vm8, %v1392_v10  ;;  %vm2657_vm8 = vmmov %vm2655_vm1 }
0x1856   :  { %1757 = vrot.lane.b32.xlu1 %v1756_v14, %s2039_s3 }
0x1857   :  { %v1543_v11 = vpop.permute.xlu0 %1542 }
0x1858   :  { %v1545_v13 = vadd.f32 %v1872_v54, %v1543_v11 }
0x185a   :  { %v1553_v16 = vsel %vm2645_vm10, %v1545_v13, 0.0  ;;  %v1563_v4 = vsel %vm2648_vm11, %v1545_v13, %v1561_v7 }
0x185b   :  { %v1763_v17 = vpop.permute.xlu2 %1762  ;;  %1555 = vrot.lane.b32.xlu0 %v1553_v16, %s2037_s23 }
0x185c   :  { %v1764_v33 = vunpack.i.l.bf16 %v1763_v17  ;;  %v1765_v34 = vunpack.i.h.bf16 %v1763_v17 }
0x185e   :  { %694 = vrot.lane.b32.xlu1 %v692_v38, %s2041_s30 }
0x185f   :  { %v1031_v40 = vpop.permute.xlu0 %1030 }
0x1860   :  { %1033 = vst.msk [vmem:[#allocation3 + $0x6] sm:$0x3] %vm2646_vm0, %v1031_v40 }
0x1863   :  { %515 = vrot.lane.b32.xlu0 %v513_v36, %s2041_s30  ;;  %v861_v18 = vpop.permute.xlu2 %860 }
0x1864   :  { %863 = vst.msk [vmem:[#allocation3 + $0x8] sm:$0x3] %vm2647_vm12, %v861_v18 }
0x1866   :  { %1019 = vrot.lane.b32.xlu1 %v1017_v21, %s2039_s3 }
0x186b   :  { %v1768_v41 = vpop.permute.xlu2 %1767 }
0x186c   :  { %v1770_v47 = vunpack.i.h.bf16 %v1768_v41  ;;  %v1769_v50 = vunpack.i.l.bf16 %v1768_v41 }
0x186e   :  { %1565 = vrot.lane.b32.xlu1 %v1563_v4, %s2037_s23 }
0x18b8   :  { %v1532_v25 = vpop.permute.xlu1 %1531 }
0x18b9   :  { %v1534_v19 = vadd.f32 %v2543_v48, %v1532_v25 }
0x18bb   :  { %v1547_v26 = vrot.slane %v1534_v19, 6 }
0x18bd   :  { %1548 = vrot.lane.b32.xlu0 %v1547_v26, %s2039_s3 }
0x18c0   :  { %v1215_v27 = vpop.permute.xlu1 %1214 }
0x18c1   :  { %1217 = vst.msk [vmem:[#allocation3 + $0x4] sm:$0x3] %vm2649_vm9, %v1215_v27 }
0x18c5   :  { %1772 = vrot.lane.b32.xlu0 %v1771_v28, %s2039_s3 }
0x18c8   :  { %v1758_v29 = vpop.permute.xlu1 %1757 }
0x18c9   :  { %v1760_v30 = vunpack.i.h.bf16 %v1758_v29  ;;  %v1759_v31 = vunpack.i.l.bf16 %v1758_v29 }
0x18cb   :  { %1653 = vmatpush.msra.mxu3 %v1759_v31 }
0x18cd   :  { %v1556_v35 = vpop.permute.xlu0 %1555  ;;  %1654 = vmatpush.msra.mxu3 %v1760_v30 }
0x18ce   :  { %1558 = vst.msk [vmem:[#allocation3] sm:$0x3] %vm2650_vm2, %v1556_v35 }
0x18cf   :  { %1655 = vmatpush.msra.mxu3 %v1764_v33 }
0x18d0   :  { %v695_v37 = vpop.permute.xlu1 %694 }
0x18d1   :  { %697 = vst.msk [vmem:[#allocation3 + $0xa] sm:$0x3] %vm2651_vm3, %v695_v37  ;;  %1656 = vmatpush.msra.mxu3 %v1765_v34 }
0x18d2   :  { %1206 = vst.msk [vmem:[#allocation3 + $0xa] sm:$0x3] %vm2652_vm4, %v1205_v57 }
0x18d3   :  { %1657 = vmatpush.msra.mxu3 %v1769_v50 }
0x18d5   :  { %v516_v42 = vpop.permute.xlu0 %515  ;;  %v1577_v43 = vld [vmem:[#allocation3] sm:$0xff]  ;;  %1658 = vmatpush.msra.mxu3 %v1770_v47 }
0x18d6   :  { %518 = vst.msk [vmem:[#allocation3 + $0xc] sm:$0x3] %vm2653_vm5, %v516_v42  ;;  %1737 = vmatmul.msk.f32.vlgmr.msrb.gmra.mxu2 %vm187_vm14, %v1577_v43 }
0x18d7   :  { %1383 = vst.msk [vmem:[#allocation3 + $0xc] sm:$0x3] %vm2654_vm6, %v1382_v45 }
0x18d8   :  { %v1020_v46 = vpop.permute.xlu1 %1019 }
0x18d9   :  { %1022 = vst.msk [vmem:[#allocation3 + $0x8] sm:$0x3] %vm2655_vm1, %v1020_v46 }
0x18e0   :  { %v1566_v56 = vpop.permute.xlu1 %1565 }
0x192f   :  { %v1549_v52 = vpop.permute.xlu0 %1548 }
0x1930   :  { %v1551_v53 = vsel %vm2656_vm15, %v1549_v52, 0.0  ;;  %v1559_v48 = vsel %vm2658_vm7, %v1549_v52, %v2530_v1 }
0x1931   :  { %1552 = vst.msk [vmem:[#allocation3 + $0xe] sm:$0x3] %vm2657_vm8, %v1551_v53  ;;  %v1568_v58 = vsel %vm348_vm13, %v1559_v48, %v1566_v56  ;;  %vm2659_vm13 = vmmov %vm2655_vm1 }
0x1937   :  { %v1773_v61 = vpop.permute.xlu0 %1772 }
0x1938   :  { %v1774_v22 = vunpack.i.l.bf16 %v1773_v61  ;;  %v1578_v54 = vld [vmem:[#allocation3 + $0x8] sm:$0xff]  ;;  %v1775_v55 = vunpack.i.h.bf16 %v1773_v61 }
0x1939   :  { %1738 = vmatmul.msk.f32.gmra.mxu2 %vm187_vm14, %v1578_v54 }
0x193a   :  { %1659 = vmatpush.msra.mxu3 %v1774_v22 }
0x193c   :  { %1660 = vmatpush.msra.mxu3 %v1775_v55 }
0x193d   :  { %1739 = vmatmul.msk.f32.vlgmr.msra.gmra.mxu3 %vm187_vm14, %v1568_v58 }
0x1959   :  { %v1602_v59 = vpop.f32.mrf.mxu2 }
0x195a   :  { %1608 = vst.msk [vmem:[#allocation12] sm:$0xff] %vm187_vm14, %v1602_v59 }
0x19bc   :  { %v1605_v49 = vpop.f32.mrf.mxu2 }
0x19bd   :  { %1609 = vst.msk [vmem:[#allocation12 + $0x8] sm:$0xff] %vm187_vm14, %v1605_v49 }
0x19be   :  { %1678 = dma.vmem_to_hbm [thread:$0]  %s1671_s8, 256, %s1673_s11, [#allocation6], %s2033_s13, %s2033_s13, %s2034_s14  }
0x19c0   :  { %v1662_v1 = vpop.f32.mrf.mxu3 }
0x19c1   :  { %1665 = vst.msk [vmem:[#allocation13] sm:$0x3] %vm2659_vm13, %v1662_v1 }
0x19c2   :  { %1689 = dma.vmem_to_hbm [thread:$0]  %s1685_s2, 32, %s1687_s17, [#allocation14]  }
0x19c3   :  { %2025 = dma.done.wait [#allocation6], 256  }
0x19c4   :  { %2026 = vsyncadd [#allocation6], 4294967040 }
0x19c5   :  { %2027 = dma.done.wait [#allocation14], 32  }
0x19c6   :  { %2028 = vsyncadd [#allocation14], 4294967264 }
0x19c7   :  { %1698 = vsyncpa [#allocation5], 1 }
0x19c8   :  { %1699 = vsyncpa [#allocation8], 1 }
0x19c9   :  { %1700 = vsyncpa [#allocation11], 1 }
0x19ca   :  { %1701 = vsyncpa [#allocation6], 1 }
0x19cb   :  { %1702 = vsyncpa [#allocation14], 1 }

</bundles_post_ra>
